<compile_context>
chip_gen: v7x
topology: tpu7x:2x2x1
jax: 0.10.0
libtpu: 0.0.40
codegen_flags: <defaults>
</compile_context>

<pallas_src>
import jax
import jax.numpy as jnp
from jax.experimental import pallas as pl
from jax.experimental.pallas import tpu as pltpu

C_PAD = 128  # lane-dense logits width; real num_class columns are sliced off outside.

KERNEL_PARAM_ORDER = (
    "wq", "bq", "wk", "bk", "wv", "bv", "wo", "bo",
    "ln1g", "ln1b", "w1", "b1", "w2", "b2", "ln2g", "ln2b",
    "wc1", "bc1", "wc2", "bc2",
)


def _layernorm(x, g, b, eps=1e-5):
    mu = jnp.mean(x, axis=-1, keepdims=True)
    var = jnp.mean(jnp.square(x - mu), axis=-1, keepdims=True)
    return (x - mu) * jax.lax.rsqrt(var + eps) * g + b


def _roberta_classifier_kernel(
    x_ref, mask_ref, cmask_ref,
    wq_ref, bq_ref, wk_ref, bk_ref, wv_ref, bv_ref, wo_ref, bo_ref,
    ln1g_ref, ln1b_ref, w1_ref, b1_ref, w2_ref, b2_ref, ln2g_ref, ln2b_ref,
    wc1_ref, bc1_ref, wc2_ref, bc2_ref,
    out_ref,
):
    TB, S, H = x_ref.shape
    f32 = jnp.float32
    bf16 = jnp.bfloat16

    x3 = x_ref[...]                          # [TB, S, H] f32 (kept for residual)
    xf = x3.reshape(TB * S, H)               # flatten rows: MXU sees TB*S-row tiles
    xb = xf.astype(bf16)

    # ---- encoder layer (stand-in for self.bert(...)[0]) ------------------------
    # 1/sqrt(H) is already folded into wq/bq by prepare_params().
    q = (jnp.dot(xb, wq_ref[...], preferred_element_type=f32)
         + bq_ref[...]).reshape(TB, S, H)
    k = (jnp.dot(xb, wk_ref[...], preferred_element_type=f32)
         + bk_ref[...]).reshape(TB, S, H)
    v = (jnp.dot(xb, wv_ref[...], preferred_element_type=f32)
         + bv_ref[...]).reshape(TB, S, H)

    scores = jnp.einsum("bqd,bkd->bqk", q.astype(bf16), k.astype(bf16),
                        preferred_element_type=f32)               # [TB, S, S] f32
    bias = (mask_ref[...] - 1.0)[:, None, :] * 1e9                # [TB, 1, S] additive
    probs = jax.nn.softmax(scores + bias, axis=-1)                # f32 on VPU/EUP
    ctx = jnp.einsum("bqk,bkd->bqd", probs.astype(bf16), v.astype(bf16),
                     preferred_element_type=f32)                  # [TB, S, H]

    attn = jnp.dot(ctx.reshape(TB * S, H).astype(bf16), wo_ref[...],
                   preferred_element_type=f32) + bo_ref[...]
    h = _layernorm(xf + attn, ln1g_ref[...], ln1b_ref[...])

    ff = jnp.dot(h.astype(bf16), w1_ref[...],
                 preferred_element_type=f32) + b1_ref[...]
    ff = jax.nn.gelu(ff)                                          # f32 (tanh approx)
    ff = jnp.dot(ff.astype(bf16), w2_ref[...],
                 preferred_element_type=f32) + b2_ref[...]
    enc = _layernorm(h + ff, ln2g_ref[...], ln2b_ref[...])        # [TB*S, H]
    enc3 = enc.reshape(TB, S, H)

    # ---- masked mean pooling over the (static) current utterance, in f32 -------
    cm = cmask_ref[...]                                           # [TB, S] 0/1
    num = jnp.sum(enc3 * cm[:, :, None], axis=1)                  # [TB, H]
    den = jnp.sum(cm, axis=-1, keepdims=True) + 1e-9              # [TB, 1]
    cu = num / den

    # ---- head: Linear -> Tanh -> Dropout(identity) -> Linear (lane-padded) -----
    hcls = jnp.tanh(jnp.dot(cu.astype(bf16), wc1_ref[...],
                            preferred_element_type=f32) + bc1_ref[...])
    logits = jnp.dot(hcls.astype(bf16), wc2_ref[...],
                     preferred_element_type=f32) + bc2_ref[...]   # [TB, C_PAD]
    out_ref[...] = logits.astype(out_ref.dtype)                   # sublane-dense slab


def prepare_params(params):
    """One-time prep (call ONCE, outside the forward path): fold 1/sqrt(H) into Q,
    pad classifier output to C_PAD lanes, cast matmul weights to bf16."""
    bf16 = jnp.bfloat16
    H = params["wq"].shape[0]
    scale = 1.0 / (float(H) ** 0.5)
    C = params["wc2"].shape[1]
    wc2p = jnp.zeros((H, C_PAD), jnp.float32).at[:, :C].set(params["wc2"])
    bc2p = jnp.zeros((1, C_PAD), jnp.float32).at[:, :C].set(params["bc2"])
    return dict(
        wq=(params["wq"] * scale).astype(bf16), bq=params["bq"] * scale,
        wk=params["wk"].astype(bf16), bk=params["bk"],
        wv=params["wv"].astype(bf16), bv=params["bv"],
        wo=params["wo"].astype(bf16), bo=params["bo"],
        ln1g=params["ln1g"], ln1b=params["ln1b"],
        w1=params["w1"].astype(bf16), b1=params["b1"],
        w2=params["w2"].astype(bf16), b2=params["b2"],
        ln2g=params["ln2g"], ln2b=params["ln2b"],
        wc1=params["wc1"].astype(bf16), bc1=params["bc1"],
        wc2=wc2p.astype(bf16), bc2=bc2p,
    )


def _pick_tb(batch, seq):
    """Rows per grid step: target >=128 flattened rows, keep >=2 steps for megacore."""
    tb = max(1, min(batch, 128 // max(seq, 1)))
    if batch >= 2 and batch < 2 * tb:
        tb = pl.cdiv(batch, 2)
    while batch % tb != 0:           # use a divisor of batch to avoid padding
        tb -= 1
    return tb


def _vmem_limit_bytes():
    """Generation-aware VMEM budget (v5e/v6e: 128 MiB physical; v7x: only 64 MiB)."""
    kind = ""
    try:
        kind = jax.devices()[0].device_kind.lower()
    except Exception:
        pass
    if "v5" in kind or "v6" in kind:
        return 96 * 1024 * 1024
    return 48 * 1024 * 1024          # conservative for v7x / unknown


def roberta_classifier_forward(x, mask, utt_pos_mask, prep, num_class,
                               num_future_utterances=0):
    """x: [B,S,H] f32, mask: [B,S], utt_pos_mask: [U,B,S], prep: prepare_params() output.
    Returns [B, num_class] logits."""
    B, S, H = x.shape
    U = utt_pos_mask.shape[0]
    if num_future_utterances == 0:
        cuu_pos = U - 1
    else:
        cuu_pos = int((U - 1) / 2)

    TB = _pick_tb(B, S)
    grid = (B // TB,)

    mask2 = mask.astype(jnp.float32)                        # [B, S]
    cmask2 = utt_pos_mask[cuu_pos].astype(jnp.float32)      # [B, S] (static utterance)

    args = (x, mask2, cmask2) + tuple(prep[n] for n in KERNEL_PARAM_ORDER)

    # Advisory cost estimate for the XLA scheduler.
    F = prep["w1"].shape[1]
    flops = B * (2 * S * H * H * 3            # q/k/v projections
                 + 2 * S * S * H * 2          # scores + ctx
                 + 2 * S * H * H              # wo
                 + 2 * S * H * F * 2          # ffn
                 + 2 * H * H + 2 * H * C_PAD)  # head
    transcendentals = B * (S * S + S * F + H)
    bytes_accessed = sum(int(a.size) * a.dtype.itemsize for a in args) + B * C_PAD * 4

    in_specs = [
        pl.BlockSpec((TB, S, H), lambda b: (b, 0, 0)),       # x: TB batch rows / step
        pl.BlockSpec((TB, S), lambda b: (b, 0)),             # attention mask
        pl.BlockSpec((TB, S), lambda b: (b, 0)),             # current-utterance mask
    ] + [
        # Constant-index weights: single-buffered resident blocks (no 2nd VMEM buffer).
        pl.BlockSpec(prep[n].shape, lambda b: (0, 0),
                     pipeline_mode=pl.Buffered(1))
        for n in KERNEL_PARAM_ORDER
    ]

    out = pl.pallas_call(
        _roberta_classifier_kernel,
        grid=grid,
        out_shape=jax.ShapeDtypeStruct((B, C_PAD), jnp.float32),
        in_specs=in_specs,
        out_specs=pl.BlockSpec((TB, C_PAD), lambda b: (b, 0)),
        compiler_params=pltpu.CompilerParams(
            dimension_semantics=("parallel",),
            vmem_limit_bytes=_vmem_limit_bytes()),
        cost_estimate=pl.CostEstimate(flops=flops,
                                      transcendentals=transcendentals,
                                      bytes_accessed=bytes_accessed),
    )(*args)
    return out[:, :num_class]


def reference_forward(x, mask, utt_pos_mask, params, num_future_utterances=0):
    """Pure-JAX f32 reference (same math, raw params, no Pallas) for correctness."""
    B, S, H = x.shape
    U = utt_pos_mask.shape[0]
    xf = x.reshape(B * S, H)
    q = (xf @ params["wq"] + params["bq"]).reshape(B, S, H)
    k = (xf @ params["wk"] + params["bk"]).reshape(B, S, H)
    v = (xf @ params["wv"] + params["bv"]).reshape(B, S, H)
    scores = jnp.einsum("bqd,bkd->bqk", q, k) / (float(H) ** 0.5)
    scores = scores + (1.0 - mask)[:, None, :] * (-1e9)
    probs = jax.nn.softmax(scores, axis=-1)
    ctx = jnp.einsum("bqk,bkd->bqd", probs, v).reshape(B * S, H)
    attn = ctx @ params["wo"] + params["bo"]
    h = _layernorm(xf + attn, params["ln1g"], params["ln1b"])
    ff = jax.nn.gelu(h @ params["w1"] + params["b1"])
    ff = ff @ params["w2"] + params["b2"]
    enc = _layernorm(h + ff, params["ln2g"], params["ln2b"]).reshape(B, S, H)

    num = jnp.sum(utt_pos_mask[:, :, :, None] * enc[None, :, :, :], axis=2)
    den = jnp.sum(utt_pos_mask, axis=-1) + 1e-9
    utt_xs = num / den[:, :, None]
    cuu_pos = U - 1 if num_future_utterances == 0 else int((U - 1) / 2)
    cu = utt_xs[cuu_pos]
    hcls = jnp.tanh(cu @ params["wc1"] + params["bc1"])
    return hcls @ params["wc2"] + params["bc2"]


def init_params(key, H, F, C):
    ks = jax.random.split(key, 8)

    def w(k, shape, scale=0.05):
        return (scale * jax.random.normal(k, shape)).astype(jnp.float32)

    zeros = lambda shape: jnp.zeros(shape, jnp.float32)
    ones = lambda shape: jnp.ones(shape, jnp.float32)
    return dict(
        wq=w(ks[0], (H, H)), bq=zeros((1, H)),
        wk=w(ks[1], (H, H)), bk=zeros((1, H)),
        wv=w(ks[2], (H, H)), bv=zeros((1, H)),
        wo=w(ks[3], (H, H)), bo=zeros((1, H)),
        ln1g=ones((1, H)), ln1b=zeros((1, H)),
        w1=w(ks[4], (H, F)), b1=zeros((1, F)),
        w2=w(ks[5], (F, H)), b2=zeros((1, H)),
        ln2g=ones((1, H)), ln2b=zeros((1, H)),
        wc1=w(ks[6], (H, H)), bc1=zeros((1, H)),
        wc2=w(ks[7], (H, C)), bc2=zeros((1, C)),
    )


if __name__ == "__main__":
    B, S, H, U, C = 16, 8, 32, 3, 6          # batch, seq, hidden, num_utterances, classes
    F = 4 * H                                 # FFN intermediate size
    NUM_FUTURE_UTTS = 0                       # -> cuu_pos = U - 1

    root = jax.random.PRNGKey(0)
    k_x, k_p = jax.random.split(root)

    x = jax.random.normal(k_x, (B, S, H), jnp.float32)        # PLM input embeddings
    mask = jnp.ones((B, S), jnp.float32)                      # attention mask
    mask = mask.at[1, 6:].set(0.0).at[3, 5:].set(0.0)

    # utt_pos_mask [U, B, S]: each utterance owns a contiguous span of token positions.
    upos = jnp.zeros((U, B, S), jnp.float32)
    for u, (a, b) in enumerate(((0, 3), (3, 6), (6, 8))):
        upos = upos.at[u, :, a:b].set(1.0)

    params = init_params(k_p, H, F, C)
    prep = prepare_params(params)             # hoisted: one-time weight preparation

    out = roberta_classifier_forward(x, mask, upos, prep, C, NUM_FUTURE_UTTS)
    out = jax.block_until_ready(out)
    assert out.shape == (B, C), out.shape

    ref = reference_forward(x, mask, upos, params, NUM_FUTURE_UTTS)
    # bf16 MXU operands vs. f32 reference -> relaxed (but still tight) tolerance.
    assert jnp.allclose(out, ref, atol=2e-2, rtol=2e-2), (out, ref)

    print("KERNEL_OK")
</pallas_src>

<mosaic_0001>
module attributes {stable_mosaic.version = 11 : i64} {
  func.func @_roberta_classifier_kernel(%arg0: i32, %arg1: memref<8x8x32xf32, #tpu.memory_space<vmem>>, %arg2: memref<8x8xf32, #tpu.memory_space<vmem>>, %arg3: memref<8x8xf32, #tpu.memory_space<vmem>>, %arg4: memref<32x32xbf16, #tpu.memory_space<vmem>>, %arg5: memref<1x32xf32, #tpu.memory_space<vmem>>, %arg6: memref<32x32xbf16, #tpu.memory_space<vmem>>, %arg7: memref<1x32xf32, #tpu.memory_space<vmem>>, %arg8: memref<32x32xbf16, #tpu.memory_space<vmem>>, %arg9: memref<1x32xf32, #tpu.memory_space<vmem>>, %arg10: memref<32x32xbf16, #tpu.memory_space<vmem>>, %arg11: memref<1x32xf32, #tpu.memory_space<vmem>>, %arg12: memref<1x32xf32, #tpu.memory_space<vmem>>, %arg13: memref<1x32xf32, #tpu.memory_space<vmem>>, %arg14: memref<32x128xbf16, #tpu.memory_space<vmem>>, %arg15: memref<1x128xf32, #tpu.memory_space<vmem>>, %arg16: memref<128x32xbf16, #tpu.memory_space<vmem>>, %arg17: memref<1x32xf32, #tpu.memory_space<vmem>>, %arg18: memref<1x32xf32, #tpu.memory_space<vmem>>, %arg19: memref<1x32xf32, #tpu.memory_space<vmem>>, %arg20: memref<32x32xbf16, #tpu.memory_space<vmem>>, %arg21: memref<1x32xf32, #tpu.memory_space<vmem>>, %arg22: memref<32x128xbf16, #tpu.memory_space<vmem>>, %arg23: memref<1x128xf32, #tpu.memory_space<vmem>>, %arg24: memref<8x128xf32, #tpu.memory_space<vmem>>) attributes {dimension_semantics = [#tpu.dimension_semantics<parallel>], iteration_bounds = array<i64: 2>, scalar_prefetch = 0 : i64, scratch_operands = 0 : i64, tpu.core_type = #tpu.core_type<tc>, window_params = [{transform_indices = @transform_0, window_bounds = array<i64: 8, 8, 32>}, {transform_indices = @transform_1, window_bounds = array<i64: 8, 8>}, {transform_indices = @transform_2, window_bounds = array<i64: 8, 8>}, {pipeline_mode = #tpu.pipeline_mode<synchronous>, transform_indices = @transform_3, window_bounds = array<i64: 32, 32>}, {pipeline_mode = #tpu.pipeline_mode<synchronous>, transform_indices = @transform_4, window_bounds = array<i64: 1, 32>}, {pipeline_mode = #tpu.pipeline_mode<synchronous>, transform_indices = @transform_5, window_bounds = array<i64: 32, 32>}, {pipeline_mode = #tpu.pipeline_mode<synchronous>, transform_indices = @transform_6, window_bounds = array<i64: 1, 32>}, {pipeline_mode = #tpu.pipeline_mode<synchronous>, transform_indices = @transform_7, window_bounds = array<i64: 32, 32>}, {pipeline_mode = #tpu.pipeline_mode<synchronous>, transform_indices = @transform_8, window_bounds = array<i64: 1, 32>}, {pipeline_mode = #tpu.pipeline_mode<synchronous>, transform_indices = @transform_9, window_bounds = array<i64: 32, 32>}, {pipeline_mode = #tpu.pipeline_mode<synchronous>, transform_indices = @transform_10, window_bounds = array<i64: 1, 32>}, {pipeline_mode = #tpu.pipeline_mode<synchronous>, transform_indices = @transform_11, window_bounds = array<i64: 1, 32>}, {pipeline_mode = #tpu.pipeline_mode<synchronous>, transform_indices = @transform_12, window_bounds = array<i64: 1, 32>}, {pipeline_mode = #tpu.pipeline_mode<synchronous>, transform_indices = @transform_13, window_bounds = array<i64: 32, 128>}, {pipeline_mode = #tpu.pipeline_mode<synchronous>, transform_indices = @transform_14, window_bounds = array<i64: 1, 128>}, {pipeline_mode = #tpu.pipeline_mode<synchronous>, transform_indices = @transform_15, window_bounds = array<i64: 128, 32>}, {pipeline_mode = #tpu.pipeline_mode<synchronous>, transform_indices = @transform_16, window_bounds = array<i64: 1, 32>}, {pipeline_mode = #tpu.pipeline_mode<synchronous>, transform_indices = @transform_17, window_bounds = array<i64: 1, 32>}, {pipeline_mode = #tpu.pipeline_mode<synchronous>, transform_indices = @transform_18, window_bounds = array<i64: 1, 32>}, {pipeline_mode = #tpu.pipeline_mode<synchronous>, transform_indices = @transform_19, window_bounds = array<i64: 32, 32>}, {pipeline_mode = #tpu.pipeline_mode<synchronous>, transform_indices = @transform_20, window_bounds = array<i64: 1, 32>}, {pipeline_mode = #tpu.pipeline_mode<synchronous>, transform_indices = @transform_21, window_bounds = array<i64: 32, 128>}, {pipeline_mode = #tpu.pipeline_mode<synchronous>, transform_indices = @transform_22, window_bounds = array<i64: 1, 128>}, {transform_indices = @transform_23, window_bounds = array<i64: 8, 128>}]} {
    %c0 = arith.constant 0 : index
    %c0_0 = arith.constant 0 : index
    %c0_1 = arith.constant 0 : index
    %0 = vector.load %arg1[%c0, %c0_0, %c0_1] : memref<8x8x32xf32, #tpu.memory_space<vmem>>, vector<8x8x32xf32>
    %1 = vector.shape_cast %0 : vector<8x8x32xf32> to vector<64x32xf32>
    %2 = arith.truncf %1 : vector<64x32xf32> to vector<64x32xbf16>
    %c0_2 = arith.constant 0 : index
    %c0_3 = arith.constant 0 : index
    %3 = vector.load %arg4[%c0_2, %c0_3] : memref<32x32xbf16, #tpu.memory_space<vmem>>, vector<32x32xbf16>
    %cst = arith.constant dense<0.000000e+00> : vector<64x32xf32>
    %4 = tpu.matmul %2, %3, %cst {dimension_numbers = #tpu.dot_dimension_numbers<[1], [0], [0], [1], [0, 0, 1, 1], [], []>} : vector<64x32xbf16>, vector<32x32xbf16>, vector<64x32xf32> -> vector<64x32xf32>
    %c0_4 = arith.constant 0 : index
    %c0_5 = arith.constant 0 : index
    %5 = vector.load %arg5[%c0_4, %c0_5] : memref<1x32xf32, #tpu.memory_space<vmem>>, vector<1x32xf32>
    %6 = vector.broadcast %5 : vector<1x32xf32> to vector<64x32xf32>
    %7 = arith.addf %4, %6 : vector<64x32xf32>
    %8 = vector.shape_cast %7 : vector<64x32xf32> to vector<8x8x32xf32>
    %c0_6 = arith.constant 0 : index
    %c0_7 = arith.constant 0 : index
    %9 = vector.load %arg6[%c0_6, %c0_7] : memref<32x32xbf16, #tpu.memory_space<vmem>>, vector<32x32xbf16>
    %cst_8 = arith.constant dense<0.000000e+00> : vector<64x32xf32>
    %10 = tpu.matmul %2, %9, %cst_8 {dimension_numbers = #tpu.dot_dimension_numbers<[1], [0], [0], [1], [0, 0, 1, 1], [], []>} : vector<64x32xbf16>, vector<32x32xbf16>, vector<64x32xf32> -> vector<64x32xf32>
    %c0_9 = arith.constant 0 : index
    %c0_10 = arith.constant 0 : index
    %11 = vector.load %arg7[%c0_9, %c0_10] : memref<1x32xf32, #tpu.memory_space<vmem>>, vector<1x32xf32>
    %12 = vector.broadcast %11 : vector<1x32xf32> to vector<64x32xf32>
    %13 = arith.addf %10, %12 : vector<64x32xf32>
    %14 = vector.shape_cast %13 : vector<64x32xf32> to vector<8x8x32xf32>
    %c0_11 = arith.constant 0 : index
    %c0_12 = arith.constant 0 : index
    %15 = vector.load %arg8[%c0_11, %c0_12] : memref<32x32xbf16, #tpu.memory_space<vmem>>, vector<32x32xbf16>
    %cst_13 = arith.constant dense<0.000000e+00> : vector<64x32xf32>
    %16 = tpu.matmul %2, %15, %cst_13 {dimension_numbers = #tpu.dot_dimension_numbers<[1], [0], [0], [1], [0, 0, 1, 1], [], []>} : vector<64x32xbf16>, vector<32x32xbf16>, vector<64x32xf32> -> vector<64x32xf32>
    %c0_14 = arith.constant 0 : index
    %c0_15 = arith.constant 0 : index
    %17 = vector.load %arg9[%c0_14, %c0_15] : memref<1x32xf32, #tpu.memory_space<vmem>>, vector<1x32xf32>
    %18 = vector.broadcast %17 : vector<1x32xf32> to vector<64x32xf32>
    %19 = arith.addf %16, %18 : vector<64x32xf32>
    %20 = vector.shape_cast %19 : vector<64x32xf32> to vector<8x8x32xf32>
    %21 = arith.truncf %8 : vector<8x8x32xf32> to vector<8x8x32xbf16>
    %22 = arith.truncf %14 : vector<8x8x32xf32> to vector<8x8x32xbf16>
    "tpu.trace_start"() <{level = 10 : i32, message = "bqd,bkd->bqk"}> : () -> ()
    %cst_16 = arith.constant dense<0.000000e+00> : vector<8x8x8xf32>
    %23 = tpu.matmul %21, %22, %cst_16 {dimension_numbers = #tpu.dot_dimension_numbers<[2], [2], [1], [1], [0, 0, 0, 1, 1, 1], [0], [0]>} : vector<8x8x32xbf16>, vector<8x8x32xbf16>, vector<8x8x8xf32> -> vector<8x8x8xf32>
    "tpu.trace_stop"() : () -> ()
    %c0_17 = arith.constant 0 : index
    %c0_18 = arith.constant 0 : index
    %24 = vector.load %arg2[%c0_17, %c0_18] : memref<8x8xf32, #tpu.memory_space<vmem>>, vector<8x8xf32>
    %cst_19 = arith.constant 1.000000e+00 : f32
    %25 = vector.broadcast %cst_19 : f32 to vector<8x8xf32>
    %26 = arith.subf %24, %25 : vector<8x8xf32>
    %27 = vector.shape_cast %26 : vector<8x8xf32> to vector<8x1x8xf32>
    %cst_20 = arith.constant 1.000000e+09 : f32
    %28 = vector.broadcast %cst_20 : f32 to vector<8x1x8xf32>
    %29 = arith.mulf %27, %28 : vector<8x1x8xf32>
    %30 = vector.broadcast %29 : vector<8x1x8xf32> to vector<8x8x8xf32>
    %31 = arith.addf %23, %30 : vector<8x8x8xf32>
    %cst_21 = arith.constant dense<0xFF800000> : vector<8x8xf32>
    %32 = vector.multi_reduction <maximumf>, %31, %cst_21 [2] : vector<8x8x8xf32> to vector<8x8xf32>
    %cst_22 = arith.constant 0xFF800000 : f32
    %33 = vector.broadcast %cst_22 : f32 to vector<8x8xf32>
    %34 = arith.maximumf %33, %32 : vector<8x8xf32>
    %35 = vector.shape_cast %34 : vector<8x8xf32> to vector<8x8x1xf32>
    %36 = vector.broadcast %35 : vector<8x8x1xf32> to vector<8x8x8xf32>
    %37 = arith.subf %31, %36 : vector<8x8x8xf32>
    %38 = math.exp %37 : vector<8x8x8xf32>
    %cst_23 = arith.constant dense<0.000000e+00> : vector<8x8xf32>
    %39 = vector.multi_reduction <add>, %38, %cst_23 [2] : vector<8x8x8xf32> to vector<8x8xf32>
    %40 = vector.shape_cast %39 : vector<8x8xf32> to vector<8x8x1xf32>
    %41 = vector.broadcast %40 : vector<8x8x1xf32> to vector<8x8x8xf32>
    %42 = arith.divf %38, %41 : vector<8x8x8xf32>
    %43 = arith.truncf %42 : vector<8x8x8xf32> to vector<8x8x8xbf16>
    %44 = arith.truncf %20 : vector<8x8x32xf32> to vector<8x8x32xbf16>
    "tpu.trace_start"() <{level = 10 : i32, message = "bqk,bkd->bqd"}> : () -> ()
    %cst_24 = arith.constant dense<0.000000e+00> : vector<8x8x32xf32>
    %45 = tpu.matmul %43, %44, %cst_24 {dimension_numbers = #tpu.dot_dimension_numbers<[2], [1], [1], [2], [0, 0, 0, 1, 1, 2], [0], [0]>} : vector<8x8x8xbf16>, vector<8x8x32xbf16>, vector<8x8x32xf32> -> vector<8x8x32xf32>
    "tpu.trace_stop"() : () -> ()
    %46 = vector.shape_cast %45 : vector<8x8x32xf32> to vector<64x32xf32>
    %47 = arith.truncf %46 : vector<64x32xf32> to vector<64x32xbf16>
    %c0_25 = arith.constant 0 : index
    %c0_26 = arith.constant 0 : index
    %48 = vector.load %arg10[%c0_25, %c0_26] : memref<32x32xbf16, #tpu.memory_space<vmem>>, vector<32x32xbf16>
    %cst_27 = arith.constant dense<0.000000e+00> : vector<64x32xf32>
    %49 = tpu.matmul %47, %48, %cst_27 {dimension_numbers = #tpu.dot_dimension_numbers<[1], [0], [0], [1], [0, 0, 1, 1], [], []>} : vector<64x32xbf16>, vector<32x32xbf16>, vector<64x32xf32> -> vector<64x32xf32>
    %c0_28 = arith.constant 0 : index
    %c0_29 = arith.constant 0 : index
    %50 = vector.load %arg11[%c0_28, %c0_29] : memref<1x32xf32, #tpu.memory_space<vmem>>, vector<1x32xf32>
    %51 = vector.broadcast %50 : vector<1x32xf32> to vector<64x32xf32>
    %52 = arith.addf %49, %51 : vector<64x32xf32>
    %53 = arith.addf %1, %52 : vector<64x32xf32>
    %c0_30 = arith.constant 0 : index
    %c0_31 = arith.constant 0 : index
    %54 = vector.load %arg12[%c0_30, %c0_31] : memref<1x32xf32, #tpu.memory_space<vmem>>, vector<1x32xf32>
    %c0_32 = arith.constant 0 : index
    %c0_33 = arith.constant 0 : index
    %55 = vector.load %arg13[%c0_32, %c0_33] : memref<1x32xf32, #tpu.memory_space<vmem>>, vector<1x32xf32>
    %cst_34 = arith.constant dense<0.000000e+00> : vector<64xf32>
    %56 = vector.multi_reduction <add>, %53, %cst_34 [1] : vector<64x32xf32> to vector<64xf32>
    %57 = vector.shape_cast %56 : vector<64xf32> to vector<64x1xf32>
    %cst_35 = arith.constant 3.200000e+01 : f32
    %58 = vector.broadcast %cst_35 : f32 to vector<64x1xf32>
    %59 = arith.divf %57, %58 : vector<64x1xf32>
    %60 = vector.broadcast %59 : vector<64x1xf32> to vector<64x32xf32>
    %61 = arith.subf %53, %60 : vector<64x32xf32>
    %62 = arith.mulf %61, %61 : vector<64x32xf32>
    %cst_36 = arith.constant dense<0.000000e+00> : vector<64xf32>
    %63 = vector.multi_reduction <add>, %62, %cst_36 [1] : vector<64x32xf32> to vector<64xf32>
    %64 = vector.shape_cast %63 : vector<64xf32> to vector<64x1xf32>
    %cst_37 = arith.constant 3.200000e+01 : f32
    %65 = vector.broadcast %cst_37 : f32 to vector<64x1xf32>
    %66 = arith.divf %64, %65 : vector<64x1xf32>
    %67 = vector.broadcast %59 : vector<64x1xf32> to vector<64x32xf32>
    %68 = arith.subf %53, %67 : vector<64x32xf32>
    %cst_38 = arith.constant 9.99999974E-6 : f32
    %69 = vector.broadcast %cst_38 : f32 to vector<64x1xf32>
    %70 = arith.addf %66, %69 : vector<64x1xf32>
    %71 = math.rsqrt %70 : vector<64x1xf32>
    %72 = vector.broadcast %71 : vector<64x1xf32> to vector<64x32xf32>
    %73 = arith.mulf %68, %72 : vector<64x32xf32>
    %74 = vector.broadcast %54 : vector<1x32xf32> to vector<64x32xf32>
    %75 = arith.mulf %73, %74 : vector<64x32xf32>
    %76 = vector.broadcast %55 : vector<1x32xf32> to vector<64x32xf32>
    %77 = arith.addf %75, %76 : vector<64x32xf32>
    %78 = arith.truncf %77 : vector<64x32xf32> to vector<64x32xbf16>
    %c0_39 = arith.constant 0 : index
    %c0_40 = arith.constant 0 : index
    %79 = vector.load %arg14[%c0_39, %c0_40] : memref<32x128xbf16, #tpu.memory_space<vmem>>, vector<32x128xbf16>
    %cst_41 = arith.constant dense<0.000000e+00> : vector<64x128xf32>
    %80 = tpu.matmul %78, %79, %cst_41 {dimension_numbers = #tpu.dot_dimension_numbers<[1], [0], [0], [1], [0, 0, 1, 1], [], []>} : vector<64x32xbf16>, vector<32x128xbf16>, vector<64x128xf32> -> vector<64x128xf32>
    %c0_42 = arith.constant 0 : index
    %c0_43 = arith.constant 0 : index
    %81 = vector.load %arg15[%c0_42, %c0_43] : memref<1x128xf32, #tpu.memory_space<vmem>>, vector<1x128xf32>
    %82 = vector.broadcast %81 : vector<1x128xf32> to vector<64x128xf32>
    %83 = arith.addf %80, %82 : vector<64x128xf32>
    %84 = arith.mulf %83, %83 : vector<64x128xf32>
    %85 = arith.mulf %83, %84 : vector<64x128xf32>
    %cst_44 = arith.constant 4.471500e-02 : f32
    %86 = vector.broadcast %cst_44 : f32 to vector<64x128xf32>
    %87 = arith.mulf %86, %85 : vector<64x128xf32>
    %88 = arith.addf %83, %87 : vector<64x128xf32>
    %cst_45 = arith.constant 0.797884583 : f32
    %89 = vector.broadcast %cst_45 : f32 to vector<64x128xf32>
    %90 = arith.mulf %89, %88 : vector<64x128xf32>
    %91 = math.tanh %90 : vector<64x128xf32>
    %cst_46 = arith.constant 1.000000e+00 : f32
    %92 = vector.broadcast %cst_46 : f32 to vector<64x128xf32>
    %93 = arith.addf %92, %91 : vector<64x128xf32>
    %cst_47 = arith.constant 5.000000e-01 : f32
    %94 = vector.broadcast %cst_47 : f32 to vector<64x128xf32>
    %95 = arith.mulf %94, %93 : vector<64x128xf32>
    %96 = arith.mulf %83, %95 : vector<64x128xf32>
    %97 = arith.truncf %96 : vector<64x128xf32> to vector<64x128xbf16>
    %c0_48 = arith.constant 0 : index
    %c0_49 = arith.constant 0 : index
    %98 = vector.load %arg16[%c0_48, %c0_49] : memref<128x32xbf16, #tpu.memory_space<vmem>>, vector<128x32xbf16>
    %cst_50 = arith.constant dense<0.000000e+00> : vector<64x32xf32>
    %99 = tpu.matmul %97, %98, %cst_50 {dimension_numbers = #tpu.dot_dimension_numbers<[1], [0], [0], [1], [0, 0, 1, 1], [], []>} : vector<64x128xbf16>, vector<128x32xbf16>, vector<64x32xf32> -> vector<64x32xf32>
    %c0_51 = arith.constant 0 : index
    %c0_52 = arith.constant 0 : index
    %100 = vector.load %arg17[%c0_51, %c0_52] : memref<1x32xf32, #tpu.memory_space<vmem>>, vector<1x32xf32>
    %101 = vector.broadcast %100 : vector<1x32xf32> to vector<64x32xf32>
    %102 = arith.addf %99, %101 : vector<64x32xf32>
    %103 = arith.addf %77, %102 : vector<64x32xf32>
    %c0_53 = arith.constant 0 : index
    %c0_54 = arith.constant 0 : index
    %104 = vector.load %arg18[%c0_53, %c0_54] : memref<1x32xf32, #tpu.memory_space<vmem>>, vector<1x32xf32>
    %c0_55 = arith.constant 0 : index
    %c0_56 = arith.constant 0 : index
    %105 = vector.load %arg19[%c0_55, %c0_56] : memref<1x32xf32, #tpu.memory_space<vmem>>, vector<1x32xf32>
    %cst_57 = arith.constant dense<0.000000e+00> : vector<64xf32>
    %106 = vector.multi_reduction <add>, %103, %cst_57 [1] : vector<64x32xf32> to vector<64xf32>
    %107 = vector.shape_cast %106 : vector<64xf32> to vector<64x1xf32>
    %cst_58 = arith.constant 3.200000e+01 : f32
    %108 = vector.broadcast %cst_58 : f32 to vector<64x1xf32>
    %109 = arith.divf %107, %108 : vector<64x1xf32>
    %110 = vector.broadcast %109 : vector<64x1xf32> to vector<64x32xf32>
    %111 = arith.subf %103, %110 : vector<64x32xf32>
    %112 = arith.mulf %111, %111 : vector<64x32xf32>
    %cst_59 = arith.constant dense<0.000000e+00> : vector<64xf32>
    %113 = vector.multi_reduction <add>, %112, %cst_59 [1] : vector<64x32xf32> to vector<64xf32>
    %114 = vector.shape_cast %113 : vector<64xf32> to vector<64x1xf32>
    %cst_60 = arith.constant 3.200000e+01 : f32
    %115 = vector.broadcast %cst_60 : f32 to vector<64x1xf32>
    %116 = arith.divf %114, %115 : vector<64x1xf32>
    %117 = vector.broadcast %109 : vector<64x1xf32> to vector<64x32xf32>
    %118 = arith.subf %103, %117 : vector<64x32xf32>
    %cst_61 = arith.constant 9.99999974E-6 : f32
    %119 = vector.broadcast %cst_61 : f32 to vector<64x1xf32>
    %120 = arith.addf %116, %119 : vector<64x1xf32>
    %121 = math.rsqrt %120 : vector<64x1xf32>
    %122 = vector.broadcast %121 : vector<64x1xf32> to vector<64x32xf32>
    %123 = arith.mulf %118, %122 : vector<64x32xf32>
    %124 = vector.broadcast %104 : vector<1x32xf32> to vector<64x32xf32>
    %125 = arith.mulf %123, %124 : vector<64x32xf32>
    %126 = vector.broadcast %105 : vector<1x32xf32> to vector<64x32xf32>
    %127 = arith.addf %125, %126 : vector<64x32xf32>
    %128 = vector.shape_cast %127 : vector<64x32xf32> to vector<8x8x32xf32>
    %c0_62 = arith.constant 0 : index
    %c0_63 = arith.constant 0 : index
    %129 = vector.load %arg3[%c0_62, %c0_63] : memref<8x8xf32, #tpu.memory_space<vmem>>, vector<8x8xf32>
    %130 = vector.shape_cast %129 : vector<8x8xf32> to vector<8x8x1xf32>
    %131 = vector.broadcast %130 : vector<8x8x1xf32> to vector<8x8x32xf32>
    %132 = arith.mulf %128, %131 : vector<8x8x32xf32>
    %cst_64 = arith.constant dense<0.000000e+00> : vector<8x32xf32>
    %133 = vector.multi_reduction <add>, %132, %cst_64 [1] : vector<8x8x32xf32> to vector<8x32xf32>
    %cst_65 = arith.constant dense<0.000000e+00> : vector<8xf32>
    %134 = vector.multi_reduction <add>, %129, %cst_65 [1] : vector<8x8xf32> to vector<8xf32>
    %135 = vector.shape_cast %134 : vector<8xf32> to vector<8x1xf32>
    %cst_66 = arith.constant 9.99999971E-10 : f32
    %136 = vector.broadcast %cst_66 : f32 to vector<8x1xf32>
    %137 = arith.addf %135, %136 : vector<8x1xf32>
    %138 = vector.broadcast %137 : vector<8x1xf32> to vector<8x32xf32>
    %139 = arith.divf %133, %138 : vector<8x32xf32>
    %140 = arith.truncf %139 : vector<8x32xf32> to vector<8x32xbf16>
    %c0_67 = arith.constant 0 : index
    %c0_68 = arith.constant 0 : index
    %141 = vector.load %arg20[%c0_67, %c0_68] : memref<32x32xbf16, #tpu.memory_space<vmem>>, vector<32x32xbf16>
    %cst_69 = arith.constant dense<0.000000e+00> : vector<8x32xf32>
    %142 = tpu.matmul %140, %141, %cst_69 {dimension_numbers = #tpu.dot_dimension_numbers<[1], [0], [0], [1], [0, 0, 1, 1], [], []>} : vector<8x32xbf16>, vector<32x32xbf16>, vector<8x32xf32> -> vector<8x32xf32>
    %c0_70 = arith.constant 0 : index
    %c0_71 = arith.constant 0 : index
    %143 = vector.load %arg21[%c0_70, %c0_71] : memref<1x32xf32, #tpu.memory_space<vmem>>, vector<1x32xf32>
    %144 = vector.broadcast %143 : vector<1x32xf32> to vector<8x32xf32>
    %145 = arith.addf %142, %144 : vector<8x32xf32>
    %146 = math.tanh %145 : vector<8x32xf32>
    %147 = arith.truncf %146 : vector<8x32xf32> to vector<8x32xbf16>
    %c0_72 = arith.constant 0 : index
    %c0_73 = arith.constant 0 : index
    %148 = vector.load %arg22[%c0_72, %c0_73] : memref<32x128xbf16, #tpu.memory_space<vmem>>, vector<32x128xbf16>
    %cst_74 = arith.constant dense<0.000000e+00> : vector<8x128xf32>
    %149 = tpu.matmul %147, %148, %cst_74 {dimension_numbers = #tpu.dot_dimension_numbers<[1], [0], [0], [1], [0, 0, 1, 1], [], []>} : vector<8x32xbf16>, vector<32x128xbf16>, vector<8x128xf32> -> vector<8x128xf32>
    %c0_75 = arith.constant 0 : index
    %c0_76 = arith.constant 0 : index
    %150 = vector.load %arg23[%c0_75, %c0_76] : memref<1x128xf32, #tpu.memory_space<vmem>>, vector<1x128xf32>
    %151 = vector.broadcast %150 : vector<1x128xf32> to vector<8x128xf32>
    %152 = arith.addf %149, %151 : vector<8x128xf32>
    %c0_77 = arith.constant 0 : index
    %c0_78 = arith.constant 0 : index
    %153 = vector.load %arg24[%c0_77, %c0_78] : memref<8x128xf32, #tpu.memory_space<vmem>>, vector<8x128xf32>
    tpu.vector_store %arg24[%c0_77, %c0_78], %152 {strides = array<i32>} : memref<8x128xf32, #tpu.memory_space<vmem>>, vector<8x128xf32>,
    return
  }
  func.func @transform_0(%arg0: i32) -> (i32, i32, i32) {
    %c0_i32 = arith.constant 0 : i32
    %c0_i32_0 = arith.constant 0 : i32
    %c0_i32_1 = arith.constant 0 : i32
    return %arg0, %c0_i32, %c0_i32_0 : i32, i32, i32
  }
  func.func @transform_1(%arg0: i32) -> (i32, i32) {
    %c0_i32 = arith.constant 0 : i32
    %c0_i32_0 = arith.constant 0 : i32
    return %arg0, %c0_i32 : i32, i32
  }
  func.func @transform_2(%arg0: i32) -> (i32, i32) {
    %c0_i32 = arith.constant 0 : i32
    %c0_i32_0 = arith.constant 0 : i32
    return %arg0, %c0_i32 : i32, i32
  }
  func.func @transform_3(%arg0: i32) -> (i32, i32) {
    %c0_i32 = arith.constant 0 : i32
    %c0_i32_0 = arith.constant 0 : i32
    %c0_i32_1 = arith.constant 0 : i32
    return %c0_i32, %c0_i32_0 : i32, i32
  }
  func.func @transform_4(%arg0: i32) -> (i32, i32) {
    %c0_i32 = arith.constant 0 : i32
    %c0_i32_0 = arith.constant 0 : i32
    %c0_i32_1 = arith.constant 0 : i32
    return %c0_i32, %c0_i32_0 : i32, i32
  }
  func.func @transform_5(%arg0: i32) -> (i32, i32) {
    %c0_i32 = arith.constant 0 : i32
    %c0_i32_0 = arith.constant 0 : i32
    %c0_i32_1 = arith.constant 0 : i32
    return %c0_i32, %c0_i32_0 : i32, i32
  }
  func.func @transform_6(%arg0: i32) -> (i32, i32) {
    %c0_i32 = arith.constant 0 : i32
    %c0_i32_0 = arith.constant 0 : i32
    %c0_i32_1 = arith.constant 0 : i32
    return %c0_i32, %c0_i32_0 : i32, i32
  }
  func.func @transform_7(%arg0: i32) -> (i32, i32) {
    %c0_i32 = arith.constant 0 : i32
    %c0_i32_0 = arith.constant 0 : i32
    %c0_i32_1 = arith.constant 0 : i32
    return %c0_i32, %c0_i32_0 : i32, i32
  }
  func.func @transform_8(%arg0: i32) -> (i32, i32) {
    %c0_i32 = arith.constant 0 : i32
    %c0_i32_0 = arith.constant 0 : i32
    %c0_i32_1 = arith.constant 0 : i32
    return %c0_i32, %c0_i32_0 : i32, i32
  }
  func.func @transform_9(%arg0: i32) -> (i32, i32) {
    %c0_i32 = arith.constant 0 : i32
    %c0_i32_0 = arith.constant 0 : i32
    %c0_i32_1 = arith.constant 0 : i32
    return %c0_i32, %c0_i32_0 : i32, i32
  }
  func.func @transform_10(%arg0: i32) -> (i32, i32) {
    %c0_i32 = arith.constant 0 : i32
    %c0_i32_0 = arith.constant 0 : i32
    %c0_i32_1 = arith.constant 0 : i32
    return %c0_i32, %c0_i32_0 : i32, i32
  }
  func.func @transform_11(%arg0: i32) -> (i32, i32) {
    %c0_i32 = arith.constant 0 : i32
    %c0_i32_0 = arith.constant 0 : i32
    %c0_i32_1 = arith.constant 0 : i32
    return %c0_i32, %c0_i32_0 : i32, i32
  }
  func.func @transform_12(%arg0: i32) -> (i32, i32) {
    %c0_i32 = arith.constant 0 : i32
    %c0_i32_0 = arith.constant 0 : i32
    %c0_i32_1 = arith.constant 0 : i32
    return %c0_i32, %c0_i32_0 : i32, i32
  }
  func.func @transform_13(%arg0: i32) -> (i32, i32) {
    %c0_i32 = arith.constant 0 : i32
    %c0_i32_0 = arith.constant 0 : i32
    %c0_i32_1 = arith.constant 0 : i32
    return %c0_i32, %c0_i32_0 : i32, i32
  }
  func.func @transform_14(%arg0: i32) -> (i32, i32) {
    %c0_i32 = arith.constant 0 : i32
    %c0_i32_0 = arith.constant 0 : i32
    %c0_i32_1 = arith.constant 0 : i32
    return %c0_i32, %c0_i32_0 : i32, i32
  }
  func.func @transform_15(%arg0: i32) -> (i32, i32) {
    %c0_i32 = arith.constant 0 : i32
    %c0_i32_0 = arith.constant 0 : i32
    %c0_i32_1 = arith.constant 0 : i32
    return %c0_i32, %c0_i32_0 : i32, i32
  }
  func.func @transform_16(%arg0: i32) -> (i32, i32) {
    %c0_i32 = arith.constant 0 : i32
    %c0_i32_0 = arith.constant 0 : i32
    %c0_i32_1 = arith.constant 0 : i32
    return %c0_i32, %c0_i32_0 : i32, i32
  }
  func.func @transform_17(%arg0: i32) -> (i32, i32) {
    %c0_i32 = arith.constant 0 : i32
    %c0_i32_0 = arith.constant 0 : i32
    %c0_i32_1 = arith.constant 0 : i32
    return %c0_i32, %c0_i32_0 : i32, i32
  }
  func.func @transform_18(%arg0: i32) -> (i32, i32) {
    %c0_i32 = arith.constant 0 : i32
    %c0_i32_0 = arith.constant 0 : i32
    %c0_i32_1 = arith.constant 0 : i32
    return %c0_i32, %c0_i32_0 : i32, i32
  }
  func.func @transform_19(%arg0: i32) -> (i32, i32) {
    %c0_i32 = arith.constant 0 : i32
    %c0_i32_0 = arith.constant 0 : i32
    %c0_i32_1 = arith.constant 0 : i32
    return %c0_i32, %c0_i32_0 : i32, i32
  }
  func.func @transform_20(%arg0: i32) -> (i32, i32) {
    %c0_i32 = arith.constant 0 : i32
    %c0_i32_0 = arith.constant 0 : i32
    %c0_i32_1 = arith.constant 0 : i32
    return %c0_i32, %c0_i32_0 : i32, i32
  }
  func.func @transform_21(%arg0: i32) -> (i32, i32) {
    %c0_i32 = arith.constant 0 : i32
    %c0_i32_0 = arith.constant 0 : i32
    %c0_i32_1 = arith.constant 0 : i32
    return %c0_i32, %c0_i32_0 : i32, i32
  }
  func.func @transform_22(%arg0: i32) -> (i32, i32) {
    %c0_i32 = arith.constant 0 : i32
    %c0_i32_0 = arith.constant 0 : i32
    %c0_i32_1 = arith.constant 0 : i32
    return %c0_i32, %c0_i32_0 : i32, i32
  }
  func.func @transform_23(%arg0: i32) -> (i32, i32) {
    %c0_i32 = arith.constant 0 : i32
    %c0_i32_0 = arith.constant 0 : i32
    return %arg0, %c0_i32 : i32, i32
  }
}

</mosaic_0001>

<bundles_post_ra>
// kernel: tpu_custom_call.1
= control target key start
LH: loop header
LB: loop body
LE: loop exit
PB: predicated region body
PF: predicated region fallthrough
CT: control target
= control target key end

     0   :  { %s5685_s0 = inlined_call_operand.vmem [shape: f32[16,8,32], index: 0, kind: input, shape index: {}]   ;;  %s5686_s1 = inlined_call_operand.vmem [shape: f32[16,8], index: 1, kind: input, shape index: {}]   ;;  %s5687_s2 = inlined_call_operand.vmem [shape: f32[16,8], index: 2, kind: input, shape index: {}]   ;;  %s5688_s3 = inlined_call_operand.hbm [shape: bf16[32,32], index: 3, kind: input, shape index: {}]   ;;  %s5689_s4 = inlined_call_operand.hbm [shape: f32[1,32], index: 4, kind: input, shape index: {}]   ;;  %s5690_s5 = inlined_call_operand.hbm [shape: bf16[32,32], index: 5, kind: input, shape index: {}]   ;;  %s5691_s6 = inlined_call_operand.hbm [shape: f32[1,32], index: 6, kind: input, shape index: {}]   ;;  %s5692_s7 = inlined_call_operand.hbm [shape: bf16[32,32], index: 7, kind: input, shape index: {}]   ;;  %s5693_s8 = inlined_call_operand.hbm [shape: f32[1,32], index: 8, kind: input, shape index: {}]   ;;  %s5694_s9 = inlined_call_operand.vmem [shape: bf16[32,32], index: 9, kind: input, shape index: {}]   ;;  %s5695_s10 = inlined_call_operand.hbm [shape: f32[1,32], index: 10, kind: input, shape index: {}]   ;;  %s5696_s11 = inlined_call_operand.hbm [shape: f32[1,32], index: 11, kind: input, shape index: {}]   ;;  %s5697_s12 = inlined_call_operand.hbm [shape: f32[1,32], index: 12, kind: input, shape index: {}]   ;;  %s5698_s13 = inlined_call_operand.vmem [shape: bf16[32,128], index: 13, kind: input, shape index: {}]   ;;  %s5699_s14 = inlined_call_operand.hbm [shape: f32[1,128], index: 14, kind: input, shape index: {}]   ;;  %s5700_s15 = inlined_call_operand.vmem [shape: bf16[128,32], index: 15, kind: input, shape index: {}]   ;;  %s5701_s16 = inlined_call_operand.hbm [shape: f32[1,32], index: 16, kind: input, shape index: {}]   ;;  %s5702_s17 = inlined_call_operand.hbm [shape: f32[1,32], index: 17, kind: input, shape index: {}]   ;;  %s5703_s18 = inlined_call_operand.vmem [shape: f32[1,32], index: 18, kind: input, shape index: {}]   ;;  %s5704_s19 = inlined_call_operand.vmem [shape: bf16[32,32], index: 19, kind: input, shape index: {}]   ;;  %s5705_s20 = inlined_call_operand.vmem [shape: f32[1,32], index: 20, kind: input, shape index: {}]   ;;  %s5706_s21 = inlined_call_operand.hbm [shape: bf16[32,128], index: 21, kind: input, shape index: {}]   ;;  %s5707_s22 = inlined_call_operand.vmem [shape: f32[1,128], index: 22, kind: input, shape index: {}]   ;;  %s5708_s23 = inlined_call_operand.hbm [shape: f32[16,128], index: 23, kind: output, shape index: {}]  }
   0x1   :  { %5729 = sst [smem:[#allocation40_spill]] %s5685_s0 }
   0x2   :  { %5730 = sst [smem:[#allocation41_spill]] %s5686_s1 }
   0x3   :  { %5731 = sst [smem:[#allocation42_spill]] %s5687_s2 }
   0x4   :  { %5732 = sst [smem:[#allocation43_spill]] %s5688_s3 }
   0x5   :  { %5733 = sst [smem:[#allocation44_spill]] %s5689_s4 }
   0x6   :  { %5734 = sst [smem:[#allocation45_spill]] %s5690_s5 }
   0x7   :  { %5735 = sst [smem:[#allocation46_spill]] %s5691_s6 }
   0x8   :  { %5736 = sst [smem:[#allocation47_spill]] %s5692_s7 }
   0x9   :  { %5737 = sst [smem:[#allocation48_spill]] %s5693_s8 }
   0xa   :  { %5738 = sst [smem:[#allocation49_spill]] %s5696_s11 }
   0xb   :  { %5739 = sst [smem:[#allocation50_spill]] %s5699_s14 }
   0xc   :  { %5740 = sst [smem:[#allocation51_spill]] %s5702_s17 }
   0xd   :  { %5741 = sst [smem:[#allocation52_spill]] %s5703_s18 }
   0xe   :  { %5742 = sst [smem:[#allocation53_spill]] %s5705_s20 }
   0xf   :  { %5743 = sst [smem:[#allocation54_spill]] %s5707_s22 }
  0x10   :  { %5744 = sst [smem:[#allocation55_spill]] %s5708_s23 }
  0x11   :  { %28 = vsyncpa [#allocation3], 0 }
  0x12   :  { %29 = vsyncpa [#allocation6], 0 }
  0x13   :  { %30 = vsyncpa [#allocation9], 0 }
  0x14   :  { %31 = vsyncpa [#allocation12], 0 }
  0x15   :  { %32 = vsyncpa [#allocation15], 0 }
  0x16   :  { %33 = vsyncpa [#allocation18], 0 }
  0x17   :  { %34 = vsyncpa [#allocation21], 0 }
  0x18   :  { %35 = vsyncpa [#allocation4], 0 }
  0x19   :  { %37 = vsyncpa [#allocation4 + $0x1], 0  ;;  %s4731_s4 = smov 0   ;;  %s4733_s30 = smov 0  }
  0x1a   :  { %s4735_s24 = smov 0   ;;  %s4737_s25 = smov 0  }
  0x1b LB: > { %5745 = sst [smem:[#allocation32_spill]] %s4578_s4  ;;  %s4752_s5 = sadd.s32 4294967295, %s4590_s25   ;;  %s4590_s25 = sphi %s4737_s25, %s5797_s25   ;;  %s4586_s24 = sphi %s4735_s24, %s5800_s24   ;;  %s4582_s30 = sphi %s4733_s30, %s5799_s30   ;;  %s4578_s4 = sphi %s4731_s4, %s5798_s4  }
  0x1c   : > { %5746 = sst [smem:[#allocation33_spill]] %s4582_s30  ;;  %s3446_s1 = sadd.s32 4294967294, %s4590_s25  }
  0x1d   : > { %5747 = sst [smem:[#allocation34_spill]] %s4586_s24  ;;  %s4756_s26 = sadd.s32 1, %s4590_s25  }
  0x1e   : > { %5748 = sst [smem:[#allocation35_spill]] %s4590_s25  ;;  %s548_s2 = sadd.s32 1, %s4586_s24 }
  0x1f   : > { %5749 = sst [smem:[#allocation36_spill]] %s4756_s26  ;;  %s545_s6 = ssub.s32 %s4590_s25, %s4756_s26 }
  0x20   : > { %p558_p0 = scmp.ne.s32.totalorder %s4586_s24, %s4582_s30  ;;  %p546_p1 = scmp.eq.s32.totalorder %s545_s6, 0 }
  0x21   : > { %p559_p2 = scmp.eq.s32.totalorder %s4752_s5, 1  ;;  %p564_p3 = scmp.ne.s32.totalorder %s4582_s30, %s4578_s4 }
  0x22   : > { %p565_p4 = scmp.eq.s32.totalorder %s3446_s1, 1  ;;  %p3447_p7 = scmp.ge.s32.totalorder %s4590_s25, 1 }
  0x23   : > { %s4767_s27 = scalar_select %p546_p1, %s4586_s24, %s548_s2  }
  0x24   : > { %p4769_p5 = por %p559_p2, %p558_p0  ;;  %p4773_p6 = por %p565_p4, %p564_p3 }
  0x25   : > { %5750 = sst [smem:[#allocation37_spill]] %s4767_s27  ;;  %p572_p8 = scmp.lt.s32.totalorder %s4590_s25, 3 }
  0x26   : > { %s5751_s7 = scalar_select %p4769_p5, 1, 0 }
  0x27   : > { %s5753_s28 = scalar_select %p4773_p6, 1, 0 }
  0x28   : > { %5752 = sst [smem:[#allocation38_spill]] %s5751_s7  ;;  %p5723_p9 = scmp.eq.s32.totalorder %s4752_s5, 0 }
  0x29   : > { %5754 = sst [smem:[#allocation39_spill]] %s5753_s28  ;;  %p4780_p10 = pnand %p3447_p7, %p572_p8 }
  0x2a   : > { %s4592_s3 = smov [#allocation5]   ;;  %s4593_s1 = smov [#allocation8]  }
  0x2b   : > { %s5755_s29 = scalar_select %p4780_p10, 1, 0 }
  0x2c   : > { %s598_s0 = sshll.u32 %s4592_s3, 4  ;;  %p3892_p11 = pneg %p4780_p10  ;;  %s599_s0 = int_to_ptr.vmem [resolvable:$true] %s598_s0 }
  0x2d   : > { %s622_s2 = sshll.u32 %s4593_s1, 4  ;;  %s4594_s27 = smov [#allocation11]   ;;  %s4792_s2 = int_to_ptr.vmem [resolvable:$true] %s622_s2 }
  0x2e   : > { %p4788_p12 = pnand %p5723_p9, %p3892_p11  ;;  %s646_s24 = sshll.u32 %s4594_s27, 4  ;;  %s4794_s24 = int_to_ptr.vmem [resolvable:$true] %s646_s24 }
  0x2f   : > { %s5757_s3 = sld [smem:[#allocation44_spill]] }
  0x30   : > { %p4804_p0 = pneg %p4788_p12 }
  0x35   : > { %s4136_s4 = scalar_lea.hbm %s5757_s3, 16 }
  0x36   : > { %p4137_p13 = scmp.ne.s32.totalorder %s5757_s3, %s4136_s4  ;;  %p4143_p3 = scmp.lt.u32.totalorder %s4136_s4, %s5757_s3 }
  0x38   : > { %p4139_p1 = pnand %p4804_p0, %p4137_p13 }
  0x3a   : > { %p4140_p2 = pneg %p4139_p1 }
  0x3c   : > { %p4145_p4 = pnand %p4143_p3, %p4140_p2 }
  0x3e   : > { %4148 = shalt.err (!%p4145_p4)
}
  0x3f   : > { %s4149_s26 = scalar_lea.vmem %s599_s0, 16  ;;  %s4156_s23 = scalar_lea.vmem %s599_s0, 32 }
  0x40   : > { %p4150_p7 = scmp.ne.s32.totalorder %s599_s0, %s4149_s26  ;;  %p4157_p9 = scmp.lt.s32.totalorder %s599_s0, %s599_s0 }
  0x41   : > { %p4158_p6 = scmp.lt.s32.totalorder %s4156_s23, %s4149_s26 }
  0x42   : > { %p4152_p8 = pnand %p4150_p7, %p4804_p0 }
  0x43   : > { %p4159_p5 = por %p4158_p6, %p4157_p9 }
  0x44   : > { %p4153_p11 = pneg %p4152_p8 }
  0x46   : > { %p4160_p10 = pnand %p4159_p5, %p4153_p11 }
  0x48   : > { %4163 = shalt.err (!%p4160_p10)
}
  0x49   : > { %3898 = dma.hbm_to_vmem [thread:$0]  (!%p4788_p12), %s5757_s3, 16, %s599_s0, [#allocation6]  }
  0x4a   : > { %s5759_s27 = sld [smem:[#allocation46_spill]] }
  0x50   : > { %s4164_s22 = scalar_lea.hbm %s5759_s27, 16 }
  0x51   : > { %p4165_p13 = scmp.ne.s32.totalorder %s5759_s27, %s4164_s22  ;;  %p4171_p5 = scmp.lt.u32.totalorder %s4164_s22, %s5759_s27 }
  0x53   : > { %p4167_p1 = pnand %p4165_p13, %p4804_p0 }
  0x55   : > { %p4168_p6 = pneg %p4167_p1 }
  0x57   : > { %p4173_p9 = pnand %p4171_p5, %p4168_p6 }
  0x59   : > { %4176 = shalt.err (!%p4173_p9)
}
  0x5a   : > { %s4177_s0 = scalar_lea.vmem %s4792_s2, 16  ;;  %s4184_s20 = scalar_lea.vmem %s4792_s2, 32 }
  0x5b   : > { %p4178_p10 = scmp.ne.s32.totalorder %s4792_s2, %s4177_s0  ;;  %p4185_p4 = scmp.lt.s32.totalorder %s4792_s2, %s4792_s2 }
  0x5c   : > { %p4186_p7 = scmp.lt.s32.totalorder %s4184_s20, %s4177_s0 }
  0x5d   : > { %p4180_p2 = pnand %p4178_p10, %p4804_p0 }
  0x5e   : > { %p4187_p8 = por %p4186_p7, %p4185_p4 }
  0x5f   : > { %p4181_p3 = pneg %p4180_p2 }
  0x61   : > { %p4188_p11 = pnand %p4187_p8, %p4181_p3 }
  0x63   : > { %4191 = shalt.err (!%p4188_p11)
}
  0x64   : > { %3904 = dma.hbm_to_vmem [thread:$0]  (!%p4788_p12), %s5759_s27, 16, %s4792_s2, [#allocation9]  }
  0x65   : > { %s5760_s8 = sld [smem:[#allocation48_spill]] }
  0x6b   : > { %s4192_s4 = scalar_lea.hbm %s5760_s8, 16 }
  0x6c   : > { %p4193_p13 = scmp.ne.s32.totalorder %s5760_s8, %s4192_s4  ;;  %p4199_p5 = scmp.lt.u32.totalorder %s4192_s4, %s5760_s8 }
  0x6e   : > { %p4195_p1 = pnand %p4193_p13, %p4804_p0 }
  0x70   : > { %p4196_p6 = pneg %p4195_p1 }
  0x72   : > { %p4201_p9 = pnand %p4199_p5, %p4196_p6 }
  0x74   : > { %4204 = shalt.err (!%p4201_p9)
}
  0x75   : > { %s4205_s2 = scalar_lea.vmem %s4794_s24, 16  ;;  %s4212_s20 = scalar_lea.vmem %s4794_s24, 32 }
  0x76   : > { %p4206_p10 = scmp.ne.s32.totalorder %s4794_s24, %s4205_s2  ;;  %p4213_p4 = scmp.lt.s32.totalorder %s4794_s24, %s4794_s24 }
  0x77   : > { %p4214_p7 = scmp.lt.s32.totalorder %s4212_s20, %s4205_s2 }
  0x78   : > { %p4208_p2 = pnand %p4206_p10, %p4804_p0 }
  0x79   : > { %p4215_p8 = por %p4214_p7, %p4213_p4 }
  0x7a   : > { %p4209_p3 = pneg %p4208_p2 }
  0x7c   : > { %p4216_p11 = pnand %p4215_p8, %p4209_p3 }
  0x7e   : > { %4219 = shalt.err (!%p4216_p11)
}
  0x7f   : > { %3910 = dma.hbm_to_vmem [thread:$0]  (!%p4788_p12), %s5760_s8, 16, %s4794_s24, [#allocation12]  }
  0x80   : > { %s4595_s25 = smov [#allocation14]   ;;  %s4596_s4 = smov [#allocation17]  }
  0x81   : > { %s671_s28 = sshll.u32 %s4595_s25, 4  ;;  %s696_s7 = sshll.u32 %s4596_s4, 4  ;;  %s672_s28 = int_to_ptr.vmem [resolvable:$true] %s671_s28  ;;  %s697_s7 = int_to_ptr.vmem [resolvable:$true] %s696_s7 }
  0x82   : > { %s5761_s11 = sld [smem:[#allocation49_spill]] }
  0x88   : > { %s4220_s0 = scalar_lea.hbm %s5761_s11, 16 }
  0x89   : > { %p4221_p13 = scmp.ne.s32.totalorder %s5761_s11, %s4220_s0  ;;  %p4227_p5 = scmp.lt.u32.totalorder %s4220_s0, %s5761_s11 }
  0x8b   : > { %p4223_p1 = pnand %p4221_p13, %p4804_p0 }
  0x8d   : > { %p4224_p6 = pneg %p4223_p1 }
  0x8f   : > { %p4229_p9 = pnand %p4227_p5, %p4224_p6 }
  0x91   : > { %4232 = shalt.err (!%p4229_p9)
}
  0x92   : > { %s4233_s24 = scalar_lea.vmem %s672_s28, 16  ;;  %s4240_s30 = scalar_lea.vmem %s672_s28, 32 }
  0x93   : > { %p4234_p10 = scmp.ne.s32.totalorder %s672_s28, %s4233_s24  ;;  %p4241_p4 = scmp.lt.s32.totalorder %s672_s28, %s672_s28 }
  0x94   : > { %p4242_p7 = scmp.lt.s32.totalorder %s4240_s30, %s4233_s24 }
  0x95   : > { %p4236_p2 = pnand %p4234_p10, %p4804_p0 }
  0x96   : > { %p4243_p8 = por %p4242_p7, %p4241_p4 }
  0x97   : > { %p4237_p3 = pneg %p4236_p2 }
  0x99   : > { %p4244_p11 = pnand %p4243_p8, %p4237_p3 }
  0x9b   : > { %4247 = shalt.err (!%p4244_p11)
}
  0x9c   : > { %3916 = dma.hbm_to_vmem [thread:$0]  (!%p4788_p12), %s5761_s11, 16, %s672_s28, [#allocation15]  }
  0x9d   : > { %s5762_s14 = sld [smem:[#allocation50_spill]] }
  0xa3   : > { %s4248_s23 = scalar_lea.hbm %s5762_s14, 16 }
  0xa4   : > { %p4249_p13 = scmp.ne.s32.totalorder %s5762_s14, %s4248_s23  ;;  %p4255_p5 = scmp.lt.u32.totalorder %s4248_s23, %s5762_s14 }
  0xa6   : > { %p4251_p1 = pnand %p4249_p13, %p4804_p0 }
  0xa8   : > { %p4252_p6 = pneg %p4251_p1 }
  0xaa   : > { %p4257_p9 = pnand %p4255_p5, %p4252_p6 }
  0xac   : > { %4260 = shalt.err (!%p4257_p9)
}
  0xad   : > { %s4261_s24 = scalar_lea.vmem %s697_s7, 16  ;;  %s4268_s28 = scalar_lea.vmem %s697_s7, 32 }
  0xae   : > { %p4262_p10 = scmp.ne.s32.totalorder %s697_s7, %s4261_s24  ;;  %p4269_p4 = scmp.lt.s32.totalorder %s697_s7, %s697_s7 }
  0xaf   : > { %p4270_p7 = scmp.lt.s32.totalorder %s4268_s28, %s4261_s24 }
  0xb0   : > { %p4264_p2 = pnand %p4262_p10, %p4804_p0 }
  0xb1   : > { %p4271_p8 = por %p4270_p7, %p4269_p4 }
  0xb2   : > { %p4265_p3 = pneg %p4264_p2 }
  0xb4   : > { %p4272_p11 = pnand %p4271_p8, %p4265_p3 }
  0xb6   : > { %4275 = shalt.err (!%p4272_p11)
}
  0xb7   : > { %3922 = dma.hbm_to_vmem [thread:$0]  (!%p4788_p12), %s5762_s14, 16, %s697_s7, [#allocation18]  }
  0xb8   : > { %s4597_s4 = smov [#allocation20]   ;;  %s4598_s26 = smov [#allocation2]  }
  0xb9   : > { %s721_s3 = sshll.u32 %s4597_s4, 4  ;;  %s584_s23 = sshll.u32 %s4598_s26, 4  ;;  %s722_s3 = int_to_ptr.vmem [resolvable:$true] %s721_s3  ;;  %s585_s23 = int_to_ptr.vmem [resolvable:$true] %s584_s23 }
  0xba   : > { %s5763_s17 = sld [smem:[#allocation51_spill]] }
  0xc0   : > { %s4276_s20 = scalar_lea.hbm %s5763_s17, 16 }
  0xc1   : > { %p4277_p13 = scmp.ne.s32.totalorder %s5763_s17, %s4276_s20  ;;  %p4283_p5 = scmp.lt.u32.totalorder %s4276_s20, %s5763_s17 }
  0xc3   : > { %p4279_p1 = pnand %p4277_p13, %p4804_p0 }
  0xc5   : > { %p4280_p6 = pneg %p4279_p1 }
  0xc7   : > { %p4285_p9 = pnand %p4283_p5, %p4280_p6 }
  0xc9   : > { %4288 = shalt.err (!%p4285_p9)
}
  0xca   : > { %s4289_s7 = scalar_lea.vmem %s722_s3, 16  ;;  %s4296_s25 = scalar_lea.vmem %s722_s3, 32 }
  0xcb   : > { %p4290_p10 = scmp.ne.s32.totalorder %s722_s3, %s4289_s7  ;;  %p4297_p4 = scmp.lt.s32.totalorder %s722_s3, %s722_s3 }
  0xcc   : > { %p4298_p7 = scmp.lt.s32.totalorder %s4296_s25, %s4289_s7 }
  0xcd   : > { %p4292_p2 = pnand %p4290_p10, %p4804_p0 }
  0xce   : > { %p4299_p8 = por %p4298_p7, %p4297_p4 }
  0xcf   : > { %p4293_p3 = pneg %p4292_p2 }
  0xd1   : > { %p4300_p11 = pnand %p4299_p8, %p4293_p3 }
  0xd3   : > { %4303 = shalt.err (!%p4300_p11)
}
  0xd4   : > { %3928 = dma.hbm_to_vmem [thread:$0]  (!%p4788_p12), %s5763_s17, 16, %s722_s3, [#allocation21]  }
  0xd5   : > { %s5764_s20 = sld [smem:[#allocation43_spill]] }
  0xdb   : > { %s4304_s22 = scalar_lea.hbm %s5764_s20, 256 }
  0xdc   : > { %p4305_p13 = scmp.ne.s32.totalorder %s5764_s20, %s4304_s22  ;;  %p4311_p5 = scmp.lt.u32.totalorder %s4304_s22, %s5764_s20 }
  0xde   : > { %p4307_p1 = pnand %p4305_p13, %p4804_p0 }
  0xe0   : > { %p4308_p6 = pneg %p4307_p1 }
  0xe2   : > { %p4313_p9 = pnand %p4311_p5, %p4308_p6 }
  0xe4   : > { %4316 = shalt.err (!%p4313_p9)
}
  0xe5   : > { %s4317_s25 = scalar_lea.vmem %s585_s23, 256  ;;  %p4325_p4 = scmp.lt.s32.totalorder %s585_s23, %s585_s23 }
  0xe6   : > { %p4318_p10 = scmp.ne.s32.totalorder %s585_s23, %s4317_s25  ;;  %p4326_p7 = scmp.lt.s32.totalorder %s4317_s25, %s4317_s25 }
  0xe8   : > { %p4320_p2 = pnand %p4318_p10, %p4804_p0  ;;  %p4327_p8 = por %p4326_p7, %p4325_p4 }
  0xea   : > { %p4321_p3 = pneg %p4320_p2 }
  0xec   : > { %p4328_p11 = pnand %p4327_p8, %p4321_p3 }
  0xee   : > { %4331 = shalt.err (!%p4328_p11)
}
  0xef   : > { %s4599_s3 = smov 64   ;;  %s4600_s4 = smov 4  }
  0xf0   : > { %3895 = dma.hbm_to_vmem [thread:$0]  (!%p4788_p12), %s5764_s20, 256, %s585_s23, [#allocation3], %s4599_s3, %s4599_s3, %s4600_s4  }
  0xf1   : > { %s4601_s2 = smov [#allocation7]   ;;  %s4602_s24 = smov [#allocation10]  }
  0xf2   : > { %s608_s22 = sshll.u32 %s4601_s2, 4  ;;  %s632_s28 = sshll.u32 %s4602_s24, 4  ;;  %s609_s22 = int_to_ptr.vmem [resolvable:$true] %s608_s22  ;;  %s633_s28 = int_to_ptr.vmem [resolvable:$true] %s632_s28 }
  0xf3   : > { %s5765_s25 = sld [smem:[#allocation45_spill]] }
  0xf9   : > { %s5766_s8 = smov %s5765_s25  ;;  %s4332_s11 = scalar_lea.hbm %s5765_s25, 256 }
  0xfa   : > { %p4333_p13 = scmp.ne.s32.totalorder %s5766_s8, %s4332_s11  ;;  %p4339_p5 = scmp.lt.u32.totalorder %s4332_s11, %s5766_s8 }
  0xfc   : > { %p4335_p1 = pnand %p4333_p13, %p4804_p0 }
  0xfe   : > { %p4336_p6 = pneg %p4335_p1 }
 0x100   : > { %p4341_p9 = pnand %p4339_p5, %p4336_p6 }
 0x102   : > { %4344 = shalt.err (!%p4341_p9)
}
 0x103   : > { %s4345_s23 = scalar_lea.vmem %s609_s22, 256  ;;  %p4353_p4 = scmp.lt.s32.totalorder %s609_s22, %s609_s22 }
 0x104   : > { %p4346_p10 = scmp.ne.s32.totalorder %s609_s22, %s4345_s23  ;;  %p4354_p7 = scmp.lt.s32.totalorder %s4345_s23, %s4345_s23 }
 0x106   : > { %p4348_p2 = pnand %p4346_p10, %p4804_p0  ;;  %p4355_p8 = por %p4354_p7, %p4353_p4 }
 0x108   : > { %p4349_p3 = pneg %p4348_p2 }
 0x10a   : > { %p4356_p11 = pnand %p4355_p8, %p4349_p3 }
 0x10c   : > { %4359 = shalt.err (!%p4356_p11)
}
 0x10d   : > { %3901 = dma.hbm_to_vmem [thread:$0]  (!%p4788_p12), %s5766_s8, 256, %s609_s22, [#allocation6], %s4599_s3, %s4599_s3, %s4600_s4  }
 0x10e   : > { %s5767_s27 = sld [smem:[#allocation47_spill]] }
 0x114   : > { %s4360_s26 = scalar_lea.hbm %s5767_s27, 256 }
 0x115   : > { %p4361_p13 = scmp.ne.s32.totalorder %s5767_s27, %s4360_s26  ;;  %p4367_p5 = scmp.lt.u32.totalorder %s4360_s26, %s5767_s27 }
 0x117   : > { %p4363_p1 = pnand %p4361_p13, %p4804_p0 }
 0x119   : > { %p4364_p6 = pneg %p4363_p1 }
 0x11b   : > { %p4369_p9 = pnand %p4367_p5, %p4364_p6 }
 0x11d   : > { %4372 = shalt.err (!%p4369_p9)
}
 0x11e   : > { %s4373_s7 = scalar_lea.vmem %s633_s28, 256  ;;  %p4381_p4 = scmp.lt.s32.totalorder %s633_s28, %s633_s28 }
 0x11f   : > { %p4374_p10 = scmp.ne.s32.totalorder %s633_s28, %s4373_s7  ;;  %p4382_p7 = scmp.lt.s32.totalorder %s4373_s7, %s4373_s7 }
 0x121   : > { %p4376_p2 = pnand %p4374_p10, %p4804_p0  ;;  %p4383_p8 = por %p4382_p7, %p4381_p4 }
 0x123   : > { %p4377_p3 = pneg %p4376_p2 }
 0x125   : > { %p4384_p11 = pnand %p4383_p8, %p4377_p3 }
 0x127   : > { %4387 = shalt.err (!%p4384_p11)
}
 0x128   : > { %3907 = dma.hbm_to_vmem [thread:$0]  (!%p4788_p12), %s5767_s27, 256, %s633_s28, [#allocation9], %s4599_s3, %s4599_s3, %s4600_s4  }
 0x129   : > { %s4603_s23 = smov [#allocation13]   ;;  %s4604_s11 = smov [#allocation16]  }
 0x12a   : > { %s660_s14 = sshll.u32 %s4603_s23, 4  ;;  %s682_s17 = sshll.u32 %s4604_s11, 4  ;;  %s661_s14 = int_to_ptr.vmem [resolvable:$true] %s660_s14  ;;  %s683_s17 = int_to_ptr.vmem [resolvable:$true] %s682_s17 }
 0x12b   : > { %s4388_s0 = scalar_lea.hbm %s5695_s10, 16 }
 0x12c   : > { %p4389_p13 = scmp.ne.s32.totalorder %s5695_s10, %s4388_s0  ;;  %p4395_p5 = scmp.lt.u32.totalorder %s4388_s0, %s5695_s10 }
 0x12e   : > { %p4391_p1 = pnand %p4389_p13, %p4804_p0 }
 0x130   : > { %p4392_p6 = pneg %p4391_p1 }
 0x132   : > { %p4397_p9 = pnand %p4395_p5, %p4392_p6 }
 0x134   : > { %4400 = shalt.err (!%p4397_p9)
}
 0x135   : > { %s4401_s28 = scalar_lea.vmem %s661_s14, 16  ;;  %s4408_s22 = scalar_lea.vmem %s661_s14, 32 }
 0x136   : > { %p4402_p10 = scmp.ne.s32.totalorder %s661_s14, %s4401_s28  ;;  %p4409_p4 = scmp.lt.s32.totalorder %s661_s14, %s661_s14 }
 0x137   : > { %p4410_p7 = scmp.lt.s32.totalorder %s4408_s22, %s4401_s28 }
 0x138   : > { %p4404_p2 = pnand %p4402_p10, %p4804_p0 }
 0x139   : > { %p4411_p8 = por %p4410_p7, %p4409_p4 }
 0x13a   : > { %p4405_p3 = pneg %p4404_p2 }
 0x13c   : > { %p4412_p11 = pnand %p4411_p8, %p4405_p3 }
 0x13e   : > { %4415 = shalt.err (!%p4412_p11)
}
 0x13f   : > { %3913 = dma.hbm_to_vmem [thread:$0]  (!%p4788_p12), %s5695_s10, 16, %s661_s14, [#allocation12]  }
 0x140   : > { %s4416_s26 = scalar_lea.hbm %s5697_s12, 16 }
 0x141   : > { %p4417_p13 = scmp.ne.s32.totalorder %s5697_s12, %s4416_s26  ;;  %p4423_p5 = scmp.lt.u32.totalorder %s4416_s26, %s5697_s12 }
 0x143   : > { %p4419_p1 = pnand %p4417_p13, %p4804_p0 }
 0x145   : > { %p4420_p6 = pneg %p4419_p1 }
 0x147   : > { %p4425_p9 = pnand %p4423_p5, %p4420_p6 }
 0x149   : > { %4428 = shalt.err (!%p4425_p9)
}
 0x14a   : > { %s4429_s7 = scalar_lea.vmem %s683_s17, 16  ;;  %s4436_s14 = scalar_lea.vmem %s683_s17, 32 }
 0x14b   : > { %p4430_p10 = scmp.ne.s32.totalorder %s683_s17, %s4429_s7  ;;  %p4437_p4 = scmp.lt.s32.totalorder %s683_s17, %s683_s17 }
 0x14c   : > { %p4438_p7 = scmp.lt.s32.totalorder %s4436_s14, %s4429_s7 }
 0x14d   : > { %p4432_p2 = pnand %p4430_p10, %p4804_p0 }
 0x14e   : > { %p4439_p8 = por %p4438_p7, %p4437_p4 }
 0x14f   : > { %p4433_p3 = pneg %p4432_p2 }
 0x151   : > { %p4440_p11 = pnand %p4439_p8, %p4433_p3 }
 0x153   : > { %4443 = shalt.err (!%p4440_p11)
}
 0x154   : > { %3919 = dma.hbm_to_vmem [thread:$0]  (!%p4788_p12), %s5697_s12, 16, %s683_s17, [#allocation15]  }
 0x155   : > { %s4605_s25 = smov [#allocation19]   ;;  %s4606_s11 = smov [#allocation22]  }
 0x156   : > { %s710_s23 = sshll.u32 %s4605_s25, 4  ;;  %s740_s18 = sshll.u32 %s4606_s11, 4  ;;  %s711_s23 = int_to_ptr.vmem [resolvable:$true] %s710_s23  ;;  %s741_s18 = int_to_ptr.vmem [resolvable:$true] %s740_s18 }
 0x157   : > { %s4444_s2 = scalar_lea.hbm %s5701_s16, 16 }
 0x158   : > { %p4445_p13 = scmp.ne.s32.totalorder %s5701_s16, %s4444_s2  ;;  %p4451_p5 = scmp.lt.u32.totalorder %s4444_s2, %s5701_s16 }
 0x15a   : > { %p4447_p1 = pnand %p4445_p13, %p4804_p0 }
 0x15c   : > { %p4448_p6 = pneg %p4447_p1 }
 0x15e   : > { %p4453_p9 = pnand %p4451_p5, %p4448_p6 }
 0x160   : > { %4456 = shalt.err (!%p4453_p9)
}
 0x161   : > { %s4457_s17 = scalar_lea.vmem %s711_s23, 16  ;;  %s4464_s28 = scalar_lea.vmem %s711_s23, 32 }
 0x162   : > { %p4458_p10 = scmp.ne.s32.totalorder %s711_s23, %s4457_s17  ;;  %p4465_p4 = scmp.lt.s32.totalorder %s711_s23, %s711_s23 }
 0x163   : > { %p4466_p7 = scmp.lt.s32.totalorder %s4464_s28, %s4457_s17 }
 0x164   : > { %p4460_p2 = pnand %p4458_p10, %p4804_p0 }
 0x165   : > { %p4467_p8 = por %p4466_p7, %p4465_p4 }
 0x166   : > { %p4461_p3 = pneg %p4460_p2 }
 0x168   : > { %p4468_p11 = pnand %p4467_p8, %p4461_p3 }
 0x16a   : > { %4471 = shalt.err (!%p4468_p11)
}
 0x16b   : > { %3925 = dma.hbm_to_vmem [thread:$0]  (!%p4788_p12), %s5701_s16, 16, %s711_s23, [#allocation18]  }
 0x16c   : > { %s4472_s0 = scalar_lea.hbm %s5706_s21, 256 }
 0x16d   : > { %p4473_p13 = scmp.ne.s32.totalorder %s5706_s21, %s4472_s0  ;;  %p4479_p5 = scmp.lt.u32.totalorder %s4472_s0, %s5706_s21 }
 0x16f   : > { %p4475_p1 = pnand %p4473_p13, %p4804_p0 }
 0x171   : > { %p4476_p6 = pneg %p4475_p1 }
 0x173   : > { %p4481_p9 = pnand %p4479_p5, %p4476_p6 }
 0x175   : > { %4484 = shalt.err (!%p4481_p9)
}
 0x176   : > { %s4485_s14 = scalar_lea.vmem %s741_s18, 256  ;;  %p4493_p4 = scmp.lt.s32.totalorder %s741_s18, %s741_s18 }
 0x177   : > { %p4486_p10 = scmp.ne.s32.totalorder %s741_s18, %s4485_s14  ;;  %p4494_p7 = scmp.lt.s32.totalorder %s4485_s14, %s4485_s14 }
 0x179   : > { %p4488_p2 = pnand %p4486_p10, %p4804_p0  ;;  %p4495_p8 = por %p4494_p7, %p4493_p4 }
 0x17b   : > { %p4489_p3 = pneg %p4488_p2 }
 0x17d   : > { %p4496_p11 = pnand %p4495_p8, %p4489_p3 }
 0x17f   : > { %4499 = shalt.err (!%p4496_p11)
}
 0x180   : > { %3931 = dma.hbm_to_vmem [thread:$0]  (!%p4788_p12), %s5706_s21, 256, %s741_s18, [#allocation21], %s4599_s3, %s4599_s3, %s4600_s4  }
 0x181   : > { %p5768_p13 = scmp.ne.s32.totalorder %s5755_s29, 0 }
 0x182   : > { %p5769_p0 = scmp.eq.s32.totalorder (!%p5768_p13), %s4752_s5, 0 }
 0x183   : > { %782 = sbr.rel (%p5768_p13) target bundleno = 3284 (0xcd4), region = 112 }
 0x18a   : > { %4545 = dma.done.wait (%p5769_p0), [#allocation3], 256   ;;  %p5770_p1 = pmov %p5769_p0 }
 0x18b   : > { %p5771_p6 = pmov %p5769_p0 }
 0x18c   : > { %4547 = vsyncadd (%p5770_p1), [#allocation3], 4294967040 }
 0x18d   : > { %4549 = dma.done.wait (%p5771_p6), [#allocation6], 272   ;;  %p5772_p5 = pmov %p5769_p0 }
 0x18e   : > { %p5773_p9 = pmov %p5769_p0 }
 0x18f   : > { %4551 = vsyncadd (%p5772_p5), [#allocation6], 4294967024 }
 0x190   : > { %4553 = dma.done.wait (%p5773_p9), [#allocation9], 272   ;;  %p5774_p12 = pmov %p5769_p0 }
 0x191   : > { %p5775_p10 = pmov %p5769_p0 }
 0x192   : > { %4555 = vsyncadd (%p5774_p12), [#allocation9], 4294967024 }
 0x193   : > { %4557 = dma.done.wait (%p5775_p10), [#allocation12], 32   ;;  %p5776_p2 = pmov %p5769_p0 }
 0x194   : > { %p5777_p3 = pmov %p5769_p0 }
 0x195   : > { %4559 = vsyncadd (%p5776_p2), [#allocation12], 4294967264 }
 0x196   : > { %4561 = dma.done.wait (%p5777_p3), [#allocation15], 32   ;;  %p5778_p4 = pmov %p5769_p0 }
 0x197   : > { %p5779_p7 = pmov %p5769_p0 }
 0x198   : > { %4563 = vsyncadd (%p5778_p4), [#allocation15], 4294967264 }
 0x199   : > { %4565 = dma.done.wait (%p5779_p7), [#allocation18], 32   ;;  %p5780_p8 = pmov %p5769_p0 }
 0x19a   : > { %p5781_p11 = pmov %p5769_p0 }
 0x19b   : > { %4567 = vsyncadd (%p5780_p8), [#allocation18], 4294967264 }
 0x19c   : > { %4569 = dma.done.wait (%p5781_p11), [#allocation21], 272   ;;  %p5782_p13 = pmov %p5769_p0 }
 0x19d   : > { %s3477_s29 = sshll.u32 %s4752_s5, 3  ;;  %s5783_s4 = sld [smem:[#allocation40_spill]]  ;;  %v4013_v0 = vld [vmem:[#allocation2] sm:$0xff]   ;;  %v4014_v1 = vld [vmem:[#allocation2 + $0x8] sm:$0xff]   ;;  %vm952_vm0 = vcmask 261120   ;;  %v4015_v7 = vld [vmem:[#allocation7] sm:$0xff]  }
 0x19e   : > { %4571 = vsyncadd (%p5782_p13), [#allocation21], 4294967024  ;;  %p903_p0 = scmp.lt.s32.totalorder %s3477_s29, 15  ;;  %3834 = vmatprep.subr.bf16.mxu1 %v4013_v0  ;;  %3638 = vmatprep.subr.bf16.mxu0 %v4013_v0  ;;  %v4016_v14 = vld [vmem:[#allocation7 + $0x8] sm:$0xff]   ;;  %v4017_v15 = vld [vmem:[#allocation10] sm:$0xff]   ;;  %v4607_v18 = vmov 0.0  }
 0x19f   : > { %3836 = vmatpush3.bf16.msra.mxu1 %v4013_v0  ;;  %3639 = vmatpush3.bf16.msra.mxu0 %v4013_v0  ;;  %v4018_v17 = vld [vmem:[#allocation10 + $0x8] sm:$0xff]   ;;  %vm4608_vm1 = vmmov 0   ;;  %v3488_v27 = vld [vmem:[#allocation8] ss:$0 sm:$0xff]  ;;  %vm1814_vm2 = vcmask 1043456   ;;  %p908_p1 = scmp.lt.s32.totalorder %s4752_s5, 1 }
 0x1a0   : > { %s5802_s29 = smov (!%p903_p0, %s3477_s29), 15  ;;  %3835 = vmatprep.subr.bf16.mxu1 %v4014_v1  ;;  %3640 = vmatprep.subr.bf16.mxu0 %v4014_v1  ;;  %v5141_v35 = vld [vmem:[#allocation5] ss:$0 sm:$0xff]  ;;  %s5784_s26 = sld [smem:[#allocation41_spill]]  ;;  %vm1706_vm3 = vcmask 64512   ;;  %vm3078_vm4 = vcmask 1041409  }
 0x1a1   : > { %s3478_s6 = sshll.u32 %s5802_s29, 3  ;;  %s5785_s1 = sld [smem:[#allocation42_spill]]  ;;  %vm3081_vm5 = vcmask 1042434   ;;  %vm3084_vm6 = vcmask 1043459   ;;  %vm3087_vm7 = vcmask 1044484   ;;  %vm3090_vm8 = vcmask 1045509  }
 0x1a2   : > { %s5217_s28 = scalar_select %p908_p1, %s4752_s5, 1  ;;  %vm3093_vm9 = vcmask 1046534   ;;  %vm3096_vm10 = vcmask 1047559  }
 0x1a3   : > { %s5094_s18 = scalar_lea.vmem %s5783_s4, %s3478_s6  ;;  %3837 = vmatpush3.bf16.msra.mxu1 %v4014_v1  ;;  %3641 = vmatpush3.bf16.msra.mxu0 %v4014_v1  ;;  %s5788_s30 = sld [smem:[#allocation53_spill]] }
 0x1a4   : > { %v921_v2 = vld [vmem:[%s5094_s18 + $0x20] sm:$0xff]  ;;  %v922_v3 = vld [vmem:[%s5094_s18 + $0x28] sm:$0xff]  ;;  %v923_v4 = vld [vmem:[%s5094_s18 + $0x30] sm:$0xff]  ;;  %3650 = vmatprep.subr.bf16.mxu1 %v4015_v7  ;;  %3662 = vmatprep.subr.bf16.mxu0 %v4017_v15  ;;  %s3479_s22 = sshll.u32 %s5217_s28, 3  ;;  %s5789_s29 = sld [smem:[#allocation54_spill]] }
 0x1a5   : > { %v927_v5 = vpack.c.bf16 %v922_v3, %v921_v2  ;;  %v5100_v6 = vld [vmem:[%s5094_s18 + $0x38] sm:$0xff]  ;;  %v5104_v8 = vld [vmem:[%s5094_s18] sm:$0xff]  ;;  %v5107_v9 = vld [vmem:[%s5094_s18 + $0x8] sm:$0xff]  ;;  %s5790_s6 = sld [smem:[#allocation38_spill]] }
 0x1a6   : > { %v928_v10 = vpack.c.bf16 %v5100_v6, %v923_v4  ;;  %v925_v11 = vpack.c.bf16 %v5107_v9, %v5104_v8  ;;  %v5113_v12 = vld [vmem:[%s5094_s18 + $0x10] sm:$0xff]  ;;  %v5116_v13 = vld [vmem:[%s5094_s18 + $0x18] sm:$0xff]  ;;  %s911_s0 = scalar_lea.vmem %s5784_s26, %s3479_s22  ;;  %s5786_s26 = sld [smem:[#allocation52_spill]] }
 0x1a7   : > { %3646 = vmatprep.mubr.msk.bf16.mxu1 %vm952_vm0, %v927_v5  ;;  %v926_v16 = vpack.c.bf16 %v5116_v13, %v5113_v12  ;;  %s915_s3 = scalar_lea.vmem %s5785_s1, %s3479_s22  ;;  %s3555_s1 = sshll.u32 %s4752_s5, 7 }
 0x1a8   : > { %3642 = vmatprep.mubr.msk.bf16.mxu0 %vm952_vm0, %v925_v11  ;;  %3647 = vmatmul.mubr.msk.bf16.vlgmr.msra.gmra.mrb[0].mxu1 %vm952_vm0, %v928_v10 }
 0x1a9   : > { %3643 = vmatmul.mubr.msk.bf16.vlgmr.msra.gmra.mrb[0].mxu0 %vm952_vm0, %v926_v16  ;;  %3651 = vmatpush3.bf16.msra.mxu1 %v4015_v7 }
 0x1aa   : > { %3654 = vmatprep.mubr.msk.bf16.mxu1 %vm952_vm0, %v925_v11  ;;  %3652 = vmatprep.subr.bf16.mxu1 %v4016_v14 }
 0x1ab   : > { %3663 = vmatpush3.bf16.msra.mxu0 %v4017_v15  ;;  %3666 = vmatprep.mubr.msk.bf16.mxu0 %vm952_vm0, %v925_v11  ;;  %p5792_p5 = scmp.ne.s32.totalorder %s5790_s6, 0 }
 0x1ac   : > { %3664 = vmatprep.subr.bf16.mxu0 %v4018_v17 }
 0x1ad   : > { %3653 = vmatpush3.bf16.msra.mxu1 %v4016_v14 }
 0x1ae   : > { %3674 = vmatprep.subr.bf16.mxu1 %v4607_v18 }
 0x1af   : > { %3665 = vmatpush3.bf16.msra.mxu0 %v4018_v17 }
 0x1b0   : > { %3655 = vmatmul.mubr.msk.bf16.vlgmr.msra.gmra.mrb[4].mxu1 %vm952_vm0, %v926_v16  ;;  %3686 = vmatprep.subr.bf16.mxu0 %v4607_v18 }
 0x1b1   : > { %3658 = vmatprep.mubr.msk.bf16.mxu1 %vm952_vm0, %v927_v5 }
 0x1b2   : > { %3667 = vmatmul.mubr.msk.bf16.vlgmr.msra.gmra.mrb[4].mxu0 %vm952_vm0, %v926_v16 }
 0x1b3   : > { %3670 = vmatprep.mubr.msk.bf16.mxu0 %vm952_vm0, %v927_v5 }
 0x1b8   : > { %3659 = vmatmul.mubr.msk.bf16.gmra.mrb[8].mxu1 %vm952_vm0, %v928_v10 }
 0x1b9   : > { %3676 = vmatprep.mubr.msk.bf16.mxu1 %vm4608_vm1, %v4607_v18 }
 0x1ba   : > { %3671 = vmatmul.mubr.msk.bf16.gmra.mrb[8].mxu0 %vm952_vm0, %v928_v10 }
 0x1bb   : > { %3688 = vmatprep.mubr.msk.bf16.mxu0 %vm4608_vm1, %v4607_v18 }
 0x27b   : > { %v3648_v19 = vpop.f32.mrb[0].mxu1 }
 0x27c   : > { %v3644_v20 = vpop.f32.mrb[0].mxu0  ;;  %v1015_v21 = vpop.f32.mrb[1].mxu1  ;;  %v1024_v0 = vadd.f32 %v3648_v19, %v5141_v35  ;;  %v3495_v19 = vld [vmem:[#allocation11] ss:$0 sm:$0xff] }
 0x27d   : > { %v999_v22 = vpop.f32.mrb[1].mxu0  ;;  %v5137_v23 = vpop.f32.mrb[2].mxu1  ;;  %v1008_v38 = vadd.f32 %v3644_v20, %v5141_v35  ;;  %v1016_v55 = vadd.f32 %v5141_v35, %v1015_v21 }
 0x27e   : > { %v3645_v24 = vpop.f32.mrb[2].mxu0  ;;  %v5139_v25 = vpop.f32.mrb[3].mxu1  ;;  %v1000_v41 = vadd.f32 %v5141_v35, %v999_v22  ;;  %v1212_v3 = vpack.c.bf16 %v1024_v0, %v1024_v0  ;;  %v1027_v16 = vadd.f32 %v5137_v23, %v5141_v35 }
 0x27f   : > { %v1002_v26 = vpop.f32.mrb[3].mxu0  ;;  %v1208_v43 = vpack.c.bf16 %v1008_v38, %v1008_v38  ;;  %v1210_v59 = vpack.c.bf16 %v1016_v55, %v1016_v55  ;;  %v1011_v1 = vadd.f32 %v3645_v24, %v5141_v35  ;;  %v1019_v10 = vadd.f32 %v5141_v35, %v5139_v25 }
 0x280   : > { %v1206_v46 = vpack.c.bf16 %v1000_v41, %v1000_v41  ;;  %v1003_v57 = vadd.f32 %v5141_v35, %v1002_v26  ;;  %v1213_v17 = vpack.c.bf16 %v1027_v16, %v1027_v16 }
 0x281   : > { %v1209_v4 = vpack.c.bf16 %v1011_v1, %v1011_v1  ;;  %v1211_v14 = vpack.c.bf16 %v1019_v10, %v1019_v10 }
 0x282   : > { %v1207_v61 = vpack.c.bf16 %v1003_v57, %v1003_v57  ;;  %v1222_v57 = vld [vmem:[%s911_s0] sm:$0xff]  ;;  %s5787_s0 = sld [smem:[#allocation33_spill]] }
 0x283   : > { %v3656_v28 = vpop.f32.mrb[4].mxu1 }
 0x284   : > { %v1096_v29 = vadd.f32 %v3656_v28, %v3488_v27  ;;  %v1087_v30 = vpop.f32.mrb[5].mxu1 }
 0x285   : > { %v1088_v31 = vadd.f32 %v3488_v27, %v1087_v30  ;;  %v3657_v32 = vpop.f32.mrb[6].mxu1  ;;  %v3668_v20 = vpop.f32.mrb[4].mxu0 }
 0x286   : > { %v1216_v33 = vpack.c.bf16 %v1096_v29, %v1096_v29  ;;  %v1090_v34 = vpop.f32.mrb[7].mxu1  ;;  %v1099_v52 = vadd.f32 %v3657_v32, %v3488_v27  ;;  %v1184_v21 = vadd.f32 %v3668_v20, %v3495_v19  ;;  %v1175_v22 = vpop.f32.mrb[5].mxu0 }
 0x287   : > { %v1214_v36 = vpack.c.bf16 %v1088_v31, %v1088_v31  ;;  %v1091_v40 = vadd.f32 %v3488_v27, %v1090_v34  ;;  %v1176_v24 = vadd.f32 %v3495_v19, %v1175_v22  ;;  %v3669_v25 = vpop.f32.mrb[6].mxu0 }
 0x288   : > { %v1434_v37 = vsel %vm952_vm0, %v1216_v33, 0  ;;  %v1217_v58 = vpack.c.bf16 %v1099_v52, %v1099_v52  ;;  %v1805_v26 = vpack.c.bf16 %v1184_v21, %v1184_v21  ;;  %v1178_v28 = vpop.f32.mrb[7].mxu0  ;;  %v4609_v52 = vmov 1966171168   ;;  %s899_s7 = sand.u32 1, %s5787_s0  }
 0x289   : > { %v1342_v39 = vsel %vm952_vm0, %v1214_v36, 0  ;;  %3687 = vmatpush3.bf16.xpose.msra.mxu0 %v1434_v37  ;;  %v1215_v45 = vpack.c.bf16 %v1091_v40, %v1091_v40  ;;  %v1803_v29 = vpack.c.bf16 %v1176_v24, %v1176_v24  ;;  %v1179_v23 = vadd.f32 %v3495_v19, %v1178_v28  ;;  %s3476_s14 = sshll.u32 %s899_s7, 3  ;;  %s3224_s11 = scalar_lea.sflag [#allocation4], %s899_s7 }
 0x28a   : > { %3675 = vmatpush3.bf16.xpose.msra.mxu1 %v1342_v39  ;;  %3698 = vmatprep.subr.bf16.mxu0 %v4607_v18  ;;  %v1480_v63 = vsel %vm952_vm0, %v1217_v58, 0  ;;  %v5194_v30 = vsel %vm1814_vm2, %v1805_v26, 0  ;;  %v3502_v58 = vadd.f32 -1.0, %v1222_v57 }
 0x28b   : > { %v3660_v42 = vpop.f32.mrb[8].mxu1  ;;  %3680 = vmatprep.subr.bf16.mxu1 %v4607_v18  ;;  %v1388_v53 = vsel %vm952_vm0, %v1215_v45, 0  ;;  %v1816_v32 = vsel %vm1814_vm2, %v1803_v29, 0  ;;  %v1804_v33 = vpack.c.bf16 %v1179_v23, %v1179_v23 }
 0x28c   : > { %v1103_v44 = vpop.f32.mrb[9].mxu1  ;;  %v1112_v50 = vadd.f32 %v3660_v42, %v3488_v27 }
 0x28d   : > { %v1104_v47 = vadd.f32 %v3488_v27, %v1103_v44  ;;  %v3661_v48 = vpop.f32.mrb[10].mxu1  ;;  %v1862_v35 = vsel %vm1814_vm2, %v1804_v33, 0  ;;  %v3672_v36 = vpop.f32.mrb[8].mxu0 }
 0x28e   : > { %v1106_v49 = vpop.f32.mrb[11].mxu1  ;;  %v1220_v56 = vpack.c.bf16 %v1112_v50, %v1112_v50  ;;  %v1115_v5 = vadd.f32 %v3661_v48, %v3488_v27  ;;  %v1200_v37 = vadd.f32 %v3672_v36, %v3495_v19  ;;  %v1191_v38 = vpop.f32.mrb[9].mxu0 }
 0x28f   : > { %v1218_v51 = vpack.c.bf16 %v1104_v47, %v1104_v47  ;;  %v1107_v62 = vadd.f32 %v3488_v27, %v1106_v49  ;;  %v1187_v27 = vadd.f32 %v3669_v25, %v3495_v19  ;;  %v1192_v39 = vadd.f32 %v3495_v19, %v1191_v38  ;;  %v3673_v40 = vpop.f32.mrb[10].mxu0 }
 0x290   : > { %3689 = vmatmul.mubr.msk.bf16.vlgmr.msra.gmra.mrb[12].mxu0 %vm952_vm0, %v1208_v43  ;;  %v1618_v60 = vsel %vm952_vm0, %v1220_v56, 0  ;;  %v1221_v11 = vpack.c.bf16 %v1115_v5, %v1115_v5  ;;  %v1809_v41 = vpack.c.bf16 %v1200_v37, %v1200_v37  ;;  %v1203_v42 = vadd.f32 %v3673_v40, %v3495_v19  ;;  %v1194_v43 = vpop.f32.mrb[11].mxu0 }
 0x291   : > { %v1526_v54 = vsel %vm952_vm0, %v1218_v51, 0  ;;  %3677 = vmatmul.mubr.msk.bf16.vlgmr.msra.gmra.mrb[12].mxu1 %vm952_vm0, %v1206_v46  ;;  %3700 = vmatprep.mubr.msk.bf16.mxu0 %vm4608_vm1, %v4607_v18  ;;  %v1219_v2 = vpack.c.bf16 %v1107_v62, %v1107_v62  ;;  %v1806_v31 = vpack.c.bf16 %v1187_v27, %v1187_v27  ;;  %v1807_v44 = vpack.c.bf16 %v1192_v39, %v1192_v39 }
 0x292   : > { %3681 = vmatpush3.bf16.xpose.msra.mxu1 %v1388_v53  ;;  %3699 = vmatpush3.bf16.xpose.msra.mxu0 %v1526_v54  ;;  %v1664_v15 = vsel %vm952_vm0, %v1221_v11, 0  ;;  %v1195_v45 = vadd.f32 %v3495_v19, %v1194_v43  ;;  %v5204_v46 = vsel %vm1814_vm2, %v1809_v41, 0  ;;  %v1810_v47 = vpack.c.bf16 %v1203_v42, %v1203_v42 }
 0x293   : > { %3682 = vmatprep.mubr.msk.bf16.mxu1 %vm4608_vm1, %v4607_v18  ;;  %3692 = vmatprep.subr.bf16.mxu1 %v4607_v18  ;;  %v1572_v7 = vsel %vm952_vm0, %v1219_v2, 0  ;;  %v5198_v34 = vsel %vm1814_vm2, %v1806_v31, 0  ;;  %v5207_v48 = vsel %vm1814_vm2, %v1807_v44, 0  ;;  %v1227_v53 = vunpack.c.l.s4 %v4609_v52 }
 0x294   : > { %3710 = vmatprep.subr.bf16.mxu0 %v4607_v18  ;;  %v1808_v49 = vpack.c.bf16 %v1195_v45, %v1195_v45  ;;  %v5210_v50 = vsel %vm1814_vm2, %v1810_v47, 0  ;;  %v1229_v54 = vlaneseq }
 0x295   : > { %v1228_v55 = vunpack.c.0.s8 %v1227_v53 }
 0x296   : > { %v5213_v51 = vsel %vm1814_vm2, %v1808_v49, 0  ;;  %v5225_v56 = vshrl.u32 %v1229_v54, 7 }
 0x298   : > { %v5229_v1 = vsub.s32 0, %v5225_v56 }
 0x299   : > { %3683 = vmatmul.mubr.msk.bf16.vlgmr.msra.gmra.mrb[16].mxu1 %vm952_vm0, %v1207_v61  ;;  %3701 = vmatmul.mubr.msk.bf16.vlgmr.msra.gmra.mrb[16].mxu0 %vm952_vm0, %v1210_v59  ;;  %v1231_v59 = vsub.s32 %v1228_v55, %v5225_v56 }
 0x29a   : > { %3693 = vmatpush3.bf16.xpose.msra.mxu1 %v1480_v63  ;;  %3711 = vmatpush3.bf16.xpose.msra.mxu0 %v1618_v60  ;;  %v1225_v63 = vcombine.high %v3502_v58, %v3502_v58 }
 0x29b   : > { %3694 = vmatprep.mubr.msk.bf16.mxu1 %vm4608_vm1, %v4607_v18  ;;  %3712 = vmatprep.mubr.msk.bf16.mxu0 %vm4608_vm1, %v4607_v18  ;;  %v1232_v60 = vrot.slane %v3502_v58, %v1231_v59 }
 0x29c   : > { %3704 = vmatprep.subr.bf16.mxu1 %v4607_v18  ;;  %3722 = vmatprep.subr.bf16.mxu0 %v4607_v18 }
 0x29d   : > { %v1248_v61 = vrot.slane %v1232_v60, %v1231_v59 }
 0x29f   : > { %v1270_v62 = vcombine.high %v1248_v61, %v1248_v61  ;;  %v1282_v2 = vmul.f32 1e+09, %v1248_v61 }
 0x2a1   : > { %3695 = vmatmul.mubr.msk.bf16.vlgmr.msra.gmra.mrb[20].mxu1 %vm952_vm0, %v1209_v4  ;;  %3713 = vmatmul.mubr.msk.bf16.vlgmr.msra.gmra.mrb[20].mxu0 %vm952_vm0, %v1212_v3  ;;  %v1284_v0 = vmul.f32 1e+09, %v1270_v62  ;;  %v1240_v3 = vcombine.high %v1232_v60, %v1232_v60  ;;  %v1239_v4 = vrot.slane %v1225_v63, %v1231_v59 }
 0x2a2   : > { %3705 = vmatpush3.bf16.xpose.msra.mxu1 %v1572_v7  ;;  %3706 = vmatprep.mubr.msk.bf16.mxu1 %vm4608_vm1, %v4607_v18  ;;  %v1301_v7 = vrot.slane %v1282_v2, %v5229_v1 }
 0x2a3   : > { %3716 = vmatprep.subr.bf16.mxu1 %v4607_v18  ;;  %3724 = vmatprep.mubr.msk.bf16.mxu0 %vm4608_vm1, %v4607_v18  ;;  %v1309_v5 = vrot.slane %v1284_v0, %v5229_v1  ;;  %v1262_v10 = vrot.slane %v1240_v3, %v1231_v59  ;;  %v1241_v42 = vcombine.high %v1239_v4, %v1239_v4 }
 0x2a4   : > { %3723 = vmatpush3.bf16.msra.mxu0 %v1816_v32 }
 0x2a5   : > { %3734 = vmatprep.subr.bf16.mxu0 %v4607_v18  ;;  %v1283_v22 = vmul.f32 1e+09, %v1262_v10  ;;  %v1272_v32 = vcombine.high %v1262_v10, %v1262_v10  ;;  %v1269_v55 = vrot.slane %v1241_v42, %v1231_v59 }
 0x2a7   : > { %v1305_v23 = vrot.slane %v1283_v22, %v5229_v1  ;;  %v1285_v41 = vmul.f32 1e+09, %v1272_v32  ;;  %v1287_v2 = vmul.f32 1e+09, %v1269_v55 }
 0x2a9   : > { %3707 = vmatmul.mubr.msk.bf16.vlgmr.msra.gmra.mrb[24].mxu1 %vm952_vm0, %v1211_v14  ;;  %v1255_v14 = vrot.slane %v1239_v4, %v1231_v59  ;;  %v1313_v54 = vrot.slane %v1285_v41, %v5229_v1  ;;  %v1321_v59 = vrot.slane %v1287_v2, %v5229_v1 }
 0x2aa   : > { %3717 = vmatpush3.bf16.xpose.msra.mxu1 %v1664_v15  ;;  %3718 = vmatprep.mubr.msk.bf16.mxu1 %vm4608_vm1, %v4607_v18 }
 0x2ab   : > { %3728 = vmatprep.subr.bf16.mxu1 %v4607_v18  ;;  %v1286_v29 = vmul.f32 1e+09, %v1255_v14  ;;  %v1271_v31 = vcombine.high %v1255_v14, %v1255_v14  ;;  %v1273_v14 = vcombine.high %v1269_v55, %v1269_v55 }
 0x2ad   : > { %v1317_v33 = vrot.slane %v1286_v29, %v5229_v1  ;;  %v1288_v40 = vmul.f32 1e+09, %v1271_v31 }
 0x2af   : > { %v1325_v53 = vrot.slane %v1288_v40, %v5229_v1 }
 0x2b1   : > { %3719 = vmatmul.mubr.msk.bf16.vlgmr.msra.gmra.mrb[28].mxu1 %vm952_vm0, %v1213_v17 }
 0x2b2   : > { %3730 = vmatprep.mubr.msk.bf16.mxu1 %vm4608_vm1, %v4607_v18  ;;  %3729 = vmatpush3.bf16.msra.mxu1 %v1862_v35 }
 0x2b3   : > { %3740 = vmatprep.subr.bf16.mxu1 %v4607_v18 }
 0x363   : > { %v1470_v11 = vpop.f32.mrb[12].mxu0 }
 0x364   : > { %v5233_v15 = vadd.f32 %v1470_v11, %v1309_v5  ;;  %v1378_v16 = vpop.f32.mrb[12].mxu1  ;;  %v3690_v17 = vpop.f32.mrb[13].mxu0 }
 0x365   : > { %v5235_v19 = vadd.f32 %v1378_v16, %v1301_v7  ;;  %v3678_v20 = vpop.f32.mrb[13].mxu1  ;;  %v1473_v21 = vpop.f32.mrb[14].mxu0 }
 0x366   : > { %v1713_v24 = vsel %vm1706_vm3, %v5233_v15, -inf  ;;  %v1381_v25 = vpop.f32.mrb[14].mxu1  ;;  %v3691_v26 = vpop.f32.mrb[15].mxu0  ;;  %v1289_v21 = vmul.f32 1e+09, %v1273_v14 }
 0x367   : > { %1714 = vmax.xlane.f32.xlu1 %v1713_v24  ;;  %v1707_v27 = vsel %vm1706_vm3, %v5235_v19, -inf  ;;  %v3679_v28 = vpop.f32.mrb[15].mxu1 }
 0x368   : > { %1708 = vmax.xlane.f32.xlu0 %v1707_v27  ;;  %v1329_v26 = vrot.slane %v1289_v21, %v5229_v1 }
 0x36c   : > { %v1424_v35 = vpop.f32.mrb[16].mxu1  ;;  %v1562_v36 = vpop.f32.mrb[16].mxu0 }
 0x36d   : > { %v1425_v37 = vadd.f32 %v1424_v35, %v1305_v23  ;;  %v3684_v38 = vpop.f32.mrb[17].mxu1  ;;  %v3702_v39 = vpop.f32.mrb[17].mxu0  ;;  %v1563_v45 = vadd.f32 %v1562_v36, %v1317_v33 }
 0x36e   : > { %v1427_v43 = vpop.f32.mrb[18].mxu1  ;;  %v1565_v44 = vpop.f32.mrb[18].mxu0 }
 0x36f   : > { %v3685_v47 = vpop.f32.mrb[19].mxu1  ;;  %v3703_v49 = vpop.f32.mrb[19].mxu0  ;;  %v1710_v52 = vsel %vm1706_vm3, %v1425_v37, -inf  ;;  %v1719_v57 = vsel %vm1706_vm3, %v1563_v45, -inf }
 0x370   : > { %1711 = vmax.xlane.f32.xlu0 %v1710_v52 }
 0x374   : > { %v1654_v58 = vpop.f32.mrb[20].mxu0  ;;  %1720 = vmax.xlane.f32.xlu0 %v1719_v57  ;;  %v1516_v60 = vpop.f32.mrb[20].mxu1 }
 0x375   : > { %v1655_v61 = vadd.f32 %v1654_v58, %v1325_v53  ;;  %v1517_v62 = vadd.f32 %v1516_v60, %v1313_v54  ;;  %v3696_v63 = vpop.f32.mrb[21].mxu1  ;;  %v3714_v0 = vpop.f32.mrb[21].mxu0 }
 0x376   : > { %v1519_v3 = vpop.f32.mrb[22].mxu1  ;;  %v1657_v4 = vpop.f32.mrb[22].mxu0 }
 0x377   : > { %v3697_v5 = vpop.f32.mrb[23].mxu1  ;;  %v3715_v7 = vpop.f32.mrb[23].mxu0  ;;  %v1725_v10 = vsel %vm1706_vm3, %v1655_v61, -inf  ;;  %v1716_v11 = vsel %vm1706_vm3, %v1517_v62, -inf }
 0x378   : > { %1726 = vmax.xlane.f32.xlu0 %v1725_v10  ;;  %1717 = vmax.xlane.f32.xlu1 %v1716_v11 }
 0x37c   : > { %v1608_v16 = vpop.f32.mrb[24].mxu1 }
 0x37d   : > { %v1609_v17 = vadd.f32 %v1608_v16, %v1321_v59  ;;  %v3708_v20 = vpop.f32.mrb[25].mxu1 }
 0x37e   : > { %v1611_v22 = vpop.f32.mrb[26].mxu1 }
 0x37f   : > { %v3709_v24 = vpop.f32.mrb[27].mxu1  ;;  %v1722_v25 = vsel %vm1706_vm3, %v1609_v17, -inf }
 0x380   : > { %1723 = vmax.xlane.f32.xlu1 %v1722_v25 }
 0x384   : > { %v1700_v27 = vpop.f32.mrb[28].mxu1 }
 0x385   : > { %v1701_v28 = vadd.f32 %v1700_v27, %v1329_v26  ;;  %v3720_v29 = vpop.f32.mrb[29].mxu1 }
 0x386   : > { %v1703_v23 = vpop.f32.mrb[30].mxu1 }
 0x387   : > { %v3721_v31 = vpop.f32.mrb[31].mxu1  ;;  %v1728_v32 = vsel %vm1706_vm3, %v1701_v28, -inf }
 0x388   : > { %1729 = vmax.xlane.f32.xlu1 %v1728_v32 }
 0x3f4   : > { %v1715_v33 = vpop.xlane.xlu1 %1714 }
 0x3f5   : > { %v1733_v35 = vsub.f32 %v5233_v15, %v1715_v33  ;;  %v1709_v36 = vpop.xlane.xlu0 %1708 }
 0x3f6   : > { %v1731_v38 = vsub.f32 %v5235_v19, %v1709_v36 }
 0x3f7   : > { %v1743_v39 = vmul.f32 1.442695, %v1733_v35 }
 0x3f8   : > { %v1739_v40 = vmul.f32 1.442695, %v1731_v38 }
 0x3fa   : > { %4035 = vpow2.f32 %v1739_v40 }
 0x3fb   : > { %4037 = vpow2.f32 %v1743_v39 }
 0x3fd   : > { %v1712_v41 = vpop.xlane.xlu0 %1711 }
 0x3fe   : > { %v1732_v42 = vsub.f32 %v1425_v37, %v1712_v41 }
 0x400   : > { %v1741_v43 = vmul.f32 1.442695, %v1732_v42 }
 0x401   : > { %v1721_v44 = vpop.xlane.xlu0 %1720 }
 0x402   : > { %4039 = vpow2.f32 %v1741_v43  ;;  %v1735_v47 = vsub.f32 %v1563_v45, %v1721_v44 }
 0x404   : > { %v4036_v49 = vpop.eup %4035  ;;  %v1747_v52 = vmul.f32 1.442695, %v1735_v47 }
 0x405   : > { %v1727_v53 = vpop.xlane.xlu0 %1726  ;;  %v1718_v54 = vpop.xlane.xlu1 %1717  ;;  %v1755_v55 = vsel %vm1706_vm3, %v4036_v49, 0.0 }
 0x406   : > { %v4038_v15 = vpop.eup %4037  ;;  %4041 = vpow2.f32 %v1747_v52  ;;  %v1737_v57 = vsub.f32 %v1655_v61, %v1727_v53  ;;  %v1734_v19 = vsub.f32 %v1517_v62, %v1718_v54  ;;  %1756 = vadd.xlane.f32.xlu0 %v1755_v55 }
 0x407   : > { %v1761_v63 = vsel %vm1706_vm3, %v4038_v15, 0.0 }
 0x408   : > { %v1751_v58 = vmul.f32 1.442695, %v1737_v57  ;;  %v1745_v60 = vmul.f32 1.442695, %v1734_v19  ;;  %v4019_v57 = vld [vmem:[%s5694_s9] sm:$0xff]   ;;  %v4020_v19 = vld [vmem:[%s5694_s9 + $0x8] sm:$0xff]  }
 0x40a   : > { %4043 = vpow2.f32 %v1751_v58  ;;  %1762 = vadd.xlane.f32.xlu0 %v1761_v63 }
 0x40b   : > { %4045 = vpow2.f32 %v1745_v60 }
 0x40c   : > { %v4040_v37 = vpop.eup %4039 }
 0x40d   : > { %v1724_v45 = vpop.xlane.xlu1 %1723  ;;  %v1758_v0 = vsel %vm1706_vm3, %v4040_v37, 0.0 }
 0x40e   : > { %v1736_v2 = vsub.f32 %v1609_v17, %v1724_v45  ;;  %1759 = vadd.xlane.f32.xlu1 %v1758_v0 }
 0x410   : > { %v4042_v3 = vpop.eup %4041  ;;  %v1749_v4 = vmul.f32 1.442695, %v1736_v2 }
 0x411   : > { %v1767_v5 = vsel %vm1706_vm3, %v4042_v3, 0.0 }
 0x412   : > { %4047 = vpow2.f32 %v1749_v4  ;;  %1768 = vadd.xlane.f32.xlu0 %v1767_v5 }
 0x414   : > { %v5259_v61 = vpop.eup %4043 }
 0x415   : > { %v4046_v62 = vpop.eup %4045  ;;  %v1730_v7 = vpop.xlane.xlu1 %1729  ;;  %v1773_v10 = vsel %vm1706_vm3, %v5259_v61, 0.0 }
 0x416   : > { %v1738_v11 = vsub.f32 %v1701_v28, %v1730_v7  ;;  %1774 = vadd.xlane.f32.xlu0 %v1773_v10  ;;  %v1764_v59 = vsel %vm1706_vm3, %v4046_v62, 0.0 }
 0x417   : > { %1765 = vadd.xlane.f32.xlu1 %v1764_v59 }
 0x418   : > { %v1753_v14 = vmul.f32 1.442695, %v1738_v11 }
 0x41a   : > { %4049 = vpow2.f32 %v1753_v14 }
 0x41c   : > { %v4048_v16 = vpop.eup %4047 }
 0x41d   : > { %v1770_v17 = vsel %vm1706_vm3, %v4048_v16, 0.0 }
 0x41e   : > { %1771 = vadd.xlane.f32.xlu1 %v1770_v17 }
 0x424   : > { %v5265_v20 = vpop.eup %4049 }
 0x425   : > { %v1776_v21 = vsel %vm1706_vm3, %v5265_v20, 0.0 }
 0x426   : > { %1777 = vadd.xlane.f32.xlu1 %v1776_v21 }
 0x493   : > { %v1757_v22 = vpop.xlane.xlu0 %1756 }
 0x494   : > { %4051 = vrcp.f32 %v1757_v22 }
 0x497   : > { %v1763_v24 = vpop.xlane.xlu0 %1762 }
 0x498   : > { %4053 = vrcp.f32 %v1763_v24 }
 0x49b   : > { %v1760_v25 = vpop.xlane.xlu1 %1759 }
 0x49c   : > { %4055 = vrcp.f32 %v1760_v25 }
 0x49e   : > { %v4052_v26 = vpop.eup %4051 }
 0x49f   : > { %v1780_v27 = vmul.f32 %v4052_v26, %v4036_v49  ;;  %v1769_v28 = vpop.xlane.xlu0 %1768 }
 0x4a0   : > { %4057 = vrcp.f32 %v1769_v28 }
 0x4a1   : > { %v1795_v29 = vpack.c.bf16 %v1780_v27, %v1780_v27 }
 0x4a2   : > { %v4054_v23 = vpop.eup %4053 }
 0x4a3   : > { %3725 = vmatmul.mubr.msk.bf16.vlgmr.msra.gmra.mrb[24].mxu0 %vm1706_vm3, %v1795_v29  ;;  %v1784_v32 = vmul.f32 %v4054_v23, %v4038_v15  ;;  %v1775_v33 = vpop.xlane.xlu0 %1774 }
 0x4a4   : > { %3735 = vmatpush3.bf16.msra.mxu0 %v5194_v30  ;;  %v1766_v31 = vpop.xlane.xlu1 %1765  ;;  %3736 = vmatprep.mubr.msk.bf16.mxu0 %vm4608_vm1, %v4607_v18 }
 0x4a5   : > { %4059 = vrcp.f32 %v1766_v31  ;;  %3746 = vmatprep.subr.bf16.mxu0 %v4607_v18  ;;  %v1797_v39 = vpack.c.bf16 %v1784_v32, %v1784_v32 }
 0x4a6   : > { %v4056_v35 = vpop.eup %4055  ;;  %4061 = vrcp.f32 %v1775_v33 }
 0x4a7   : > { %v1782_v36 = vmul.f32 %v4056_v35, %v4040_v37 }
 0x4a9   : > { %v1796_v38 = vpack.c.bf16 %v1782_v36, %v1782_v36 }
 0x4aa   : > { %v4058_v40 = vpop.eup %4057 }
 0x4ab   : > { %3731 = vmatmul.mubr.msk.bf16.vlgmr.msra.gmra.mrb[32].mxu1 %vm1706_vm3, %v1796_v38  ;;  %3737 = vmatmul.mubr.msk.bf16.vlgmr.msra.gmra.mrb[28].mxu0 %vm1706_vm3, %v1797_v39  ;;  %v1772_v30 = vpop.xlane.xlu1 %1771  ;;  %v1788_v41 = vmul.f32 %v4058_v40, %v4042_v3  ;;  %v3519_v39 = vld [vmem:[#allocation13] ss:$0 sm:$0xff] }
 0x4ac   : > { %3741 = vmatpush3.bf16.msra.mxu1 %v5198_v34  ;;  %3747 = vmatpush3.bf16.msra.mxu0 %v5207_v48  ;;  %4063 = vrcp.f32 %v1772_v30 }
 0x4ad   : > { %3742 = vmatprep.mubr.msk.bf16.mxu1 %vm4608_vm1, %v4607_v18  ;;  %3748 = vmatprep.mubr.msk.bf16.mxu0 %vm4608_vm1, %v4607_v18  ;;  %v1799_v44 = vpack.c.bf16 %v1788_v41, %v1788_v41 }
 0x4ae   : > { %3752 = vmatprep.subr.bf16.mxu1 %v4607_v18  ;;  %3758 = vmatprep.subr.bf16.mxu0 %v4607_v18 }
 0x4af   : > { %v4060_v42 = vpop.eup %4059 }
 0x4b0   : > { %v1786_v43 = vmul.f32 %v4060_v42, %v4046_v62  ;;  %v4062_v47 = vpop.eup %4061 }
 0x4b1   : > { %v1792_v48 = vmul.f32 %v4062_v47, %v5259_v61 }
 0x4b2   : > { %v1798_v49 = vpack.c.bf16 %v1786_v43, %v1786_v43 }
 0x4b3   : > { %3749 = vmatmul.mubr.msk.bf16.vlgmr.msra.gmra.mrb[32].mxu0 %vm1706_vm3, %v1799_v44  ;;  %v1778_v34 = vpop.xlane.xlu1 %1777  ;;  %v1801_v55 = vpack.c.bf16 %v1792_v48, %v1792_v48 }
 0x4b4   : > { %3743 = vmatmul.mubr.msk.bf16.vlgmr.msra.gmra.mrb[36].mxu1 %vm1706_vm3, %v1798_v49  ;;  %3759 = vmatpush3.bf16.msra.mxu0 %v5204_v46  ;;  %4065 = vrcp.f32 %v1778_v34 }
 0x4b5   : > { %3753 = vmatpush3.bf16.msra.mxu1 %v5213_v51  ;;  %3754 = vmatprep.mubr.msk.bf16.mxu1 %vm4608_vm1, %v4607_v18 }
 0x4b6   : > { %v4064_v52 = vpop.eup %4063  ;;  %3760 = vmatprep.mubr.msk.bf16.mxu0 %vm4608_vm1, %v4607_v18  ;;  %3764 = vmatprep.subr.bf16.mxu1 %v4607_v18 }
 0x4b7   : > { %v1790_v53 = vmul.f32 %v4064_v52, %v4048_v16  ;;  %3770 = vmatprep.subr.bf16.mxu0 %v4019_v57 }
 0x4b9   : > { %v1800_v54 = vpack.c.bf16 %v1790_v53, %v1790_v53 }
 0x4bb   : > { %3761 = vmatmul.mubr.msk.bf16.vlgmr.msra.gmra.mrb[36].mxu0 %vm1706_vm3, %v1801_v55 }
 0x4bc   : > { %3755 = vmatmul.mubr.msk.bf16.vlgmr.msra.gmra.mrb[40].mxu1 %vm1706_vm3, %v1800_v54  ;;  %3771 = vmatpush3.bf16.msra.mxu0 %v4019_v57 }
 0x4bd   : > { %3765 = vmatpush3.bf16.msra.mxu1 %v5210_v50  ;;  %3766 = vmatprep.mubr.msk.bf16.mxu1 %vm4608_vm1, %v4607_v18 }
 0x4be   : > { %v4066_v46 = vpop.eup %4065  ;;  %3772 = vmatprep.subr.bf16.mxu0 %v4020_v19 }
 0x4bf   : > { %v1794_v51 = vmul.f32 %v4066_v46, %v5265_v20 }
 0x4c0   : > { %3773 = vmatpush3.bf16.msra.mxu0 %v4020_v19 }
 0x4c1   : > { %v1802_v15 = vpack.c.bf16 %v1794_v51, %v1794_v51 }
 0x4c4   : > { %3767 = vmatmul.mubr.msk.bf16.vlgmr.msra.gmra.mrb[44].mxu1 %vm1706_vm3, %v1802_v15 }
 0x576   : > { %v1852_v50 = vpop.f32.mrb[24].mxu0 }
 0x577   : > { %v3726_v58 = vpop.f32.mrb[25].mxu0 }
 0x578   : > { %v1855_v60 = vpop.f32.mrb[26].mxu0 }
 0x579   : > { %v3727_v63 = vpop.f32.mrb[27].mxu0  ;;  %v4133_v60 = vld [vmem:[%s5094_s18 + $0x20] sm:$0xff] }
 0x57e   : > { %v1898_v37 = vpop.f32.mrb[32].mxu1  ;;  %v1944_v45 = vpop.f32.mrb[28].mxu0 }
 0x57f   : > { %v2180_v0 = vpack.c.bf16 %v1898_v37, %v1852_v50  ;;  %v3732_v2 = vpop.f32.mrb[33].mxu1  ;;  %v3738_v3 = vpop.f32.mrb[29].mxu0  ;;  %v4134_v37 = vld [vmem:[%s5094_s18 + $0x28] sm:$0xff] }
 0x580   : > { %v1901_v4 = vpop.f32.mrb[34].mxu1  ;;  %v1947_v5 = vpop.f32.mrb[30].mxu0 }
 0x581   : > { %v3733_v61 = vpop.f32.mrb[35].mxu1  ;;  %v3739_v62 = vpop.f32.mrb[31].mxu0  ;;  %3774 = vmatprep.mubr.msk.bf16.mxu0 %vm952_vm0, %v2180_v0  ;;  %v4135_v0 = vld [vmem:[%s5094_s18 + $0x30] sm:$0xff]  ;;  %s5791_s18 = sld [smem:[#allocation55_spill]] }
 0x586   : > { %v2036_v7 = vpop.f32.mrb[32].mxu0 }
 0x587   : > { %v1990_v10 = vpop.f32.mrb[36].mxu1  ;;  %v3750_v11 = vpop.f32.mrb[33].mxu0  ;;  %s5643_s25 = scalar_lea.hbm %s5791_s18, %s3555_s1 }
 0x588   : > { %v2181_v59 = vpack.c.bf16 %v1990_v10, %v1944_v45  ;;  %v3744_v14 = vpop.f32.mrb[37].mxu1  ;;  %v2039_v16 = vpop.f32.mrb[34].mxu0 }
 0x589   : > { %v1993_v17 = vpop.f32.mrb[38].mxu1  ;;  %v3751_v20 = vpop.f32.mrb[35].mxu0 }
 0x58a   : > { %v3745_v21 = vpop.f32.mrb[39].mxu1  ;;  %3775 = vmatmul.mubr.msk.bf16.vlgmr.msra.gmra.mrb[40].mxu0 %vm952_vm0, %v2181_v59 }
 0x58e   : > { %v2128_v22 = vpop.f32.mrb[36].mxu0 }
 0x58f   : > { %v2082_v24 = vpop.f32.mrb[40].mxu1  ;;  %v3762_v25 = vpop.f32.mrb[37].mxu0 }
 0x590   : > { %v2182_v26 = vpack.c.bf16 %v2082_v24, %v2036_v7  ;;  %v3756_v27 = vpop.f32.mrb[41].mxu1  ;;  %v2131_v28 = vpop.f32.mrb[38].mxu0 }
 0x591   : > { %v2085_v29 = vpop.f32.mrb[42].mxu1  ;;  %v3763_v23 = vpop.f32.mrb[39].mxu0 }
 0x592   : > { %v3757_v31 = vpop.f32.mrb[43].mxu1  ;;  %3778 = vmatprep.mubr.msk.bf16.mxu0 %vm952_vm0, %v2182_v26 }
 0x597   : > { %v2174_v32 = vpop.f32.mrb[44].mxu1 }
 0x598   : > { %v2183_v33 = vpack.c.bf16 %v2174_v32, %v2128_v22  ;;  %v3768_v35 = vpop.f32.mrb[45].mxu1 }
 0x599   : > { %v2177_v36 = vpop.f32.mrb[46].mxu1 }
 0x59a   : > { %v3769_v38 = vpop.f32.mrb[47].mxu1  ;;  %3779 = vmatmul.mubr.msk.bf16.gmra.mrb[44].mxu0 %vm952_vm0, %v2183_v33 }
 0x65d   : > { %v3776_v40 = vpop.f32.mrb[40].mxu0 }
 0x65e   : > { %v2253_v30 = vpop.f32.mrb[41].mxu0  ;;  %v2262_v41 = vadd.f32 %v3776_v40, %v3519_v39 }
 0x65f   : > { %v2254_v42 = vadd.f32 %v3519_v39, %v2253_v30  ;;  %v3777_v43 = vpop.f32.mrb[42].mxu0 }
 0x660   : > { %v2256_v44 = vpop.f32.mrb[43].mxu0  ;;  %v2265_v47 = vadd.f32 %v3777_v43, %v3519_v39  ;;  %v2286_v53 = vadd.f32 %v2262_v41, %v5113_v12 }
 0x661   : > { %v2257_v49 = vadd.f32 %v3519_v39, %v2256_v44  ;;  %v2284_v34 = vadd.f32 %v2254_v42, %v5104_v8 }
 0x662   : > { %v2287_v55 = vadd.f32 %v2265_v47, %v5116_v13  ;;  %v2300_v46 = vsel %vm952_vm0, %v2286_v53, 0.0 }
 0x663   : > { %v2294_v48 = vsel %vm952_vm0, %v2284_v34, 0.0  ;;  %v2285_v52 = vadd.f32 %v2257_v49, %v5107_v9 }
 0x664   : > { %2295 = vadd.xlane.f32.xlu0 %v2294_v48  ;;  %v2303_v8 = vsel %vm952_vm0, %v2287_v55, 0.0 }
 0x665   : > { %v2297_v54 = vsel %vm952_vm0, %v2285_v52, 0.0 }
 0x666   : > { %2298 = vadd.xlane.f32.xlu1 %v2297_v54 }
 0x668   : > { %2301 = vadd.xlane.f32.xlu0 %v2300_v46  ;;  %v4021_v46 = vld [vmem:[%s5698_s13] sm:$0xff]  }
 0x669   : > { %3782 = vmatprep.subr.bf16.mxu1 %v4021_v46 }
 0x66a   : > { %2304 = vadd.xlane.f32.xlu1 %v2303_v8  ;;  %3783 = vmatpush3.bf16.msra.mxu1 %v4021_v46  ;;  %v4022_v8 = vld [vmem:[%s5698_s13 + $0x8] sm:$0xff]  }
 0x66b   : > { %3784 = vmatprep.subr.bf16.mxu1 %v4022_v8 }
 0x66d   : > { %v3780_v51 = vpop.f32.mrb[44].mxu0 }
 0x66e   : > { %v2269_v15 = vpop.f32.mrb[45].mxu0  ;;  %v2278_v9 = vadd.f32 %v3780_v51, %v3519_v39  ;;  %3785 = vmatpush3.bf16.msra.mxu1 %v4022_v8 }
 0x66f   : > { %v2270_v57 = vadd.f32 %v3519_v39, %v2269_v15  ;;  %v3781_v12 = vpop.f32.mrb[46].mxu0  ;;  %3818 = vmatprep.subr.bf16.mxu1 %v4607_v18 }
 0x670   : > { %v2272_v19 = vpop.f32.mrb[47].mxu0  ;;  %v2281_v50 = vadd.f32 %v3781_v12, %v3519_v39  ;;  %v2290_v2 = vadd.f32 %v4135_v0, %v2278_v9  ;;  %v3526_v0 = vld [vmem:[#allocation14] ss:$0 sm:$0xff] }
 0x671   : > { %v2273_v58 = vadd.f32 %v3519_v39, %v2272_v19  ;;  %v2288_v63 = vadd.f32 %v4133_v60, %v2270_v57 }
 0x672   : > { %v2291_v4 = vadd.f32 %v2281_v50, %v5100_v6  ;;  %v2312_v5 = vsel %vm952_vm0, %v2290_v2, 0.0 }
 0x673   : > { %v2306_v13 = vsel %vm952_vm0, %v2288_v63, 0.0  ;;  %v2289_v45 = vadd.f32 %v4134_v37, %v2273_v58 }
 0x674   : > { %2307 = vadd.xlane.f32.xlu0 %v2306_v13  ;;  %v2315_v61 = vsel %vm952_vm0, %v2291_v4, 0.0 }
 0x675   : > { %v2309_v3 = vsel %vm952_vm0, %v2289_v45, 0.0 }
 0x676   : > { %2310 = vadd.xlane.f32.xlu1 %v2309_v3 }
 0x678   : > { %2313 = vadd.xlane.f32.xlu0 %v2312_v5 }
 0x67a   : > { %2316 = vadd.xlane.f32.xlu1 %v2315_v61 }
 0x6f1   : > { %v2296_v62 = vpop.xlane.xlu0 %2295 }
 0x6f2   : > { %v2319_v7 = vmul.f32 0.03125, %v2296_v62 }
 0x6f3   : > { %v2299_v10 = vpop.xlane.xlu1 %2298 }
 0x6f4   : > { %v5327_v11 = vsub.f32 %v2284_v34, %v2319_v7  ;;  %v2320_v59 = vmul.f32 0.03125, %v2299_v10 }
 0x6f5   : > { %v2302_v14 = vpop.xlane.xlu0 %2301 }
 0x6f6   : > { %v5329_v16 = vsub.f32 %v2285_v52, %v2320_v59  ;;  %v2321_v17 = vmul.f32 0.03125, %v2302_v14  ;;  %v2335_v6 = vmul.f32 %v5327_v11, %v5327_v11 }
 0x6f7   : > { %v2305_v20 = vpop.xlane.xlu1 %2304 }
 0x6f8   : > { %v5333_v21 = vsub.f32 %v2286_v53, %v2321_v17  ;;  %v2322_v22 = vmul.f32 0.03125, %v2305_v20  ;;  %v2343_v24 = vsel %vm952_vm0, %v2335_v6, 0.0  ;;  %v2336_v25 = vmul.f32 %v5329_v16, %v5329_v16  ;;  %v3527_v17 = vld [vmem:[#allocation16] ss:$0 sm:$0xff] }
 0x6f9   : > { %2344 = vadd.xlane.f32.xlu0 %v2343_v24 }
 0x6fa   : > { %v5338_v26 = vsub.f32 %v2287_v55, %v2322_v22  ;;  %v2346_v27 = vsel %vm952_vm0, %v2336_v25, 0.0  ;;  %v2337_v28 = vmul.f32 %v5333_v21, %v5333_v21 }
 0x6fb   : > { %2347 = vadd.xlane.f32.xlu1 %v2346_v27 }
 0x6fc   : > { %v2349_v29 = vsel %vm952_vm0, %v2337_v28, 0.0  ;;  %v2338_v23 = vmul.f32 %v5338_v26, %v5338_v26 }
 0x6fd   : > { %2350 = vadd.xlane.f32.xlu0 %v2349_v29 }
 0x6fe   : > { %v2352_v31 = vsel %vm952_vm0, %v2338_v23, 0.0 }
 0x6ff   : > { %2353 = vadd.xlane.f32.xlu1 %v2352_v31 }
 0x701   : > { %v2308_v32 = vpop.xlane.xlu0 %2307 }
 0x702   : > { %v2323_v33 = vmul.f32 0.03125, %v2308_v32 }
 0x703   : > { %v2311_v35 = vpop.xlane.xlu1 %2310 }
 0x704   : > { %v5347_v36 = vsub.f32 %v2288_v63, %v2323_v33  ;;  %v2324_v38 = vmul.f32 0.03125, %v2311_v35 }
 0x705   : > { %v2314_v39 = vpop.xlane.xlu0 %2313 }
 0x706   : > { %v5349_v40 = vsub.f32 %v2289_v45, %v2324_v38  ;;  %v2325_v30 = vmul.f32 0.03125, %v2314_v39  ;;  %v2339_v41 = vmul.f32 %v5347_v36, %v5347_v36 }
 0x707   : > { %v2317_v42 = vpop.xlane.xlu1 %2316 }
 0x708   : > { %v5353_v43 = vsub.f32 %v2290_v2, %v2325_v30  ;;  %v2326_v44 = vmul.f32 0.03125, %v2317_v42  ;;  %v2355_v47 = vsel %vm952_vm0, %v2339_v41, 0.0  ;;  %v2340_v49 = vmul.f32 %v5349_v40, %v5349_v40 }
 0x709   : > { %2356 = vadd.xlane.f32.xlu0 %v2355_v47 }
 0x70a   : > { %v5358_v34 = vsub.f32 %v2291_v4, %v2326_v44  ;;  %v2358_v48 = vsel %vm952_vm0, %v2340_v49, 0.0  ;;  %v2341_v52 = vmul.f32 %v5353_v43, %v5353_v43 }
 0x70b   : > { %2359 = vadd.xlane.f32.xlu1 %v2358_v48 }
 0x70c   : > { %v2361_v53 = vsel %vm952_vm0, %v2341_v52, 0.0  ;;  %v2342_v54 = vmul.f32 %v5358_v34, %v5358_v34 }
 0x70d   : > { %2362 = vadd.xlane.f32.xlu0 %v2361_v53 }
 0x70e   : > { %v2364_v55 = vsel %vm952_vm0, %v2342_v54, 0.0 }
 0x70f   : > { %2365 = vadd.xlane.f32.xlu1 %v2364_v55 }
 0x786   : > { %v2345_v51 = vpop.xlane.xlu0 %2344 }
 0x787   : > { %v2367_v15 = vmul.f32 0.03125, %v2345_v51 }
 0x788   : > { %v2348_v9 = vpop.xlane.xlu1 %2347 }
 0x789   : > { %v2375_v57 = vadd.f32 1e-05, %v2367_v15  ;;  %v2368_v12 = vmul.f32 0.03125, %v2348_v9  ;;  %v4024_v9 = vld [vmem:[%s5700_s15 + $0x8] sm:$0xff]  }
 0x78a   : > { %v2351_v19 = vpop.xlane.xlu0 %2350 }
 0x78b   : > { %4067 = vrsqrt.f32 %v2375_v57  ;;  %v2376_v50 = vadd.f32 1e-05, %v2368_v12  ;;  %v2369_v58 = vmul.f32 0.03125, %v2351_v19  ;;  %v4025_v57 = vld [vmem:[%s5700_s15 + $0x10] sm:$0xff]   ;;  %v4026_v12 = vld [vmem:[%s5700_s15 + $0x18] sm:$0xff]   ;;  %v4027_v19 = vld [vmem:[%s5700_s15 + $0x20] sm:$0xff]  }
 0x78c   : > { %v2354_v60 = vpop.xlane.xlu1 %2353 }
 0x78d   : > { %4069 = vrsqrt.f32 %v2376_v50  ;;  %v2377_v63 = vadd.f32 1e-05, %v2369_v58  ;;  %v2370_v13 = vmul.f32 0.03125, %v2354_v60  ;;  %v4028_v50 = vld [vmem:[%s5700_s15 + $0x28] sm:$0xff]   ;;  %v4029_v58 = vld [vmem:[%s5700_s15 + $0x30] sm:$0xff]   ;;  %v4030_v60 = vld [vmem:[%s5700_s15 + $0x38] sm:$0xff]  }
 0x78f   : > { %4071 = vrsqrt.f32 %v2377_v63  ;;  %v2378_v37 = vadd.f32 1e-05, %v2370_v13  ;;  %v3528_v63 = vld [vmem:[#allocation17] ss:$0 sm:$0xff] }
 0x791   : > { %4073 = vrsqrt.f32 %v2378_v37 }
 0x795   : > { %v4068_v45 = vpop.eup %4067 }
 0x796   : > { %v2391_v2 = vmul.f32 %v4068_v45, %v5327_v11  ;;  %v2357_v3 = vpop.xlane.xlu0 %2356 }
 0x797   : > { %v4070_v4 = vpop.eup %4069  ;;  %v2371_v5 = vmul.f32 0.03125, %v2357_v3 }
 0x798   : > { %v2392_v61 = vmul.f32 %v4070_v4, %v5329_v16  ;;  %v2360_v62 = vpop.xlane.xlu1 %2359  ;;  %v2405_v7 = vmul.f32 %v3526_v0, %v2391_v2 }
 0x799   : > { %v4072_v10 = vpop.eup %4071  ;;  %v2379_v59 = vadd.f32 1e-05, %v2371_v5  ;;  %v2372_v14 = vmul.f32 0.03125, %v2360_v62 }
 0x79a   : > { %v2393_v6 = vmul.f32 %v4072_v10, %v5333_v21  ;;  %v2363_v20 = vpop.xlane.xlu0 %2362  ;;  %v2406_v22 = vmul.f32 %v3526_v0, %v2392_v61  ;;  %v5378_v23 = vadd.f32 %v3527_v17, %v2405_v7 }
 0x79b   : > { %v4074_v24 = vpop.eup %4073  ;;  %4075 = vrsqrt.f32 %v2379_v59  ;;  %v2380_v25 = vadd.f32 1e-05, %v2372_v14  ;;  %v2373_v27 = vmul.f32 0.03125, %v2363_v20 }
 0x79c   : > { %v2407_v11 = vmul.f32 %v3526_v0, %v2393_v6  ;;  %v2394_v28 = vmul.f32 %v4074_v24, %v5338_v26  ;;  %v2366_v29 = vpop.xlane.xlu1 %2365  ;;  %v5380_v16 = vadd.f32 %v3527_v17, %v2406_v22 }
 0x79d   : > { %4077 = vrsqrt.f32 %v2380_v25  ;;  %v2381_v31 = vadd.f32 1e-05, %v2373_v27  ;;  %v2374_v32 = vmul.f32 0.03125, %v2366_v29 }
 0x79e   : > { %v2408_v33 = vmul.f32 %v3526_v0, %v2394_v28  ;;  %v2427_v21 = vpack.c.bf16 %v5380_v16, %v5378_v23  ;;  %v5385_v38 = vadd.f32 %v3527_v17, %v2407_v11 }
 0x79f   : > { %4079 = vrsqrt.f32 %v2381_v31  ;;  %v2382_v35 = vadd.f32 1e-05, %v2374_v32 }
 0x7a0   : > { %3786 = vmatprep.mubr.msk.bf16.mxu1 %vm952_vm0, %v2427_v21  ;;  %v5387_v39 = vadd.f32 %v3527_v17, %v2408_v33 }
 0x7a1   : > { %4081 = vrsqrt.f32 %v2382_v35 }
 0x7a2   : > { %v2428_v26 = vpack.c.bf16 %v5387_v39, %v5385_v38 }
 0x7a4   : > { %3787 = vmatmul.mubr.msk.bf16.vlgmr.msra.gmra.mrb[48].mxu1 %vm952_vm0, %v2428_v26 }
 0x7a5   : > { %v4076_v30 = vpop.eup %4075 }
 0x7a6   : > { %v2395_v41 = vmul.f32 %v4076_v30, %v5347_v36 }
 0x7a7   : > { %v4078_v42 = vpop.eup %4077 }
 0x7a8   : > { %v2396_v44 = vmul.f32 %v4078_v42, %v5349_v40  ;;  %v2409_v47 = vmul.f32 %v3526_v0, %v2395_v41 }
 0x7a9   : > { %v4080_v49 = vpop.eup %4079 }
 0x7aa   : > { %v2397_v48 = vmul.f32 %v4080_v49, %v5353_v43  ;;  %v2410_v52 = vmul.f32 %v3526_v0, %v2396_v44  ;;  %v5396_v55 = vadd.f32 %v3527_v17, %v2409_v47 }
 0x7ab   : > { %v4082_v53 = vpop.eup %4081 }
 0x7ac   : > { %v2398_v54 = vmul.f32 %v4082_v53, %v5358_v34  ;;  %v5398_v46 = vadd.f32 %v3527_v17, %v2410_v52  ;;  %v2411_v8 = vmul.f32 %v3526_v0, %v2397_v48  ;;  %v4023_v34 = vld [vmem:[%s5700_s15] sm:$0xff]  }
 0x7ad   : > { %3794 = vmatprep.subr.bf16.mxu0 %v4023_v34 }
 0x7ae   : > { %v2429_v51 = vpack.c.bf16 %v5398_v46, %v5396_v55  ;;  %v2412_v36 = vmul.f32 %v3526_v0, %v2398_v54  ;;  %v5403_v40 = vadd.f32 %v3527_v17, %v2411_v8  ;;  %3795 = vmatpush3.bf16.msra.mxu0 %v4023_v34 }
 0x7af   : > { %3796 = vmatprep.subr.bf16.mxu0 %v4024_v9 }
 0x7b0   : > { %3790 = vmatprep.mubr.msk.bf16.mxu1 %vm952_vm0, %v2429_v51  ;;  %v5405_v15 = vadd.f32 %v3527_v17, %v2412_v36 }
 0x7b2   : > { %v2430_v43 = vpack.c.bf16 %v5405_v15, %v5403_v40  ;;  %3797 = vmatpush3.bf16.msra.mxu0 %v4024_v9 }
 0x7b3   : > { %3798 = vmatprep.subr.bf16.mxu0 %v4025_v57 }
 0x7b4   : > { %3791 = vmatmul.mubr.msk.bf16.gmra.mrb[52].mxu1 %vm952_vm0, %v2430_v43 }
 0x7b5   : > { %3822 = vmatprep.mubr.msk.bf16.mxu1 %vm4608_vm1, %v4607_v18 }
 0x7b6   : > { %3799 = vmatpush3.bf16.msra.mxu0 %v4025_v57 }
 0x7b7   : > { %3800 = vmatprep.subr.bf16.mxu0 %v4026_v12 }
 0x7ba   : > { %3801 = vmatpush3.bf16.msra.mxu0 %v4026_v12 }
 0x7bb   : > { %3802 = vmatprep.subr.bf16.mxu0 %v4027_v19 }
 0x7be   : > { %3803 = vmatpush3.bf16.msra.mxu0 %v4027_v19 }
 0x7bf   : > { %3804 = vmatprep.subr.bf16.mxu0 %v4028_v50 }
 0x7c2   : > { %3805 = vmatpush3.bf16.msra.mxu0 %v4028_v50 }
 0x7c3   : > { %3806 = vmatprep.subr.bf16.mxu0 %v4029_v58 }
 0x7c6   : > { %3807 = vmatpush3.bf16.msra.mxu0 %v4029_v58 }
 0x7c7   : > { %3808 = vmatprep.subr.bf16.mxu0 %v4030_v60 }
 0x7ca   : > { %3809 = vmatpush3.bf16.msra.mxu0 %v4030_v60 }
 0x877   : > { %v3788_v13 = vpop.f32.mrb[48].mxu1 }
 0x878   : > { %v5436_v37 = vadd.f32 %v3788_v13, %v3528_v63  ;;  %v2500_v45 = vpop.f32.mrb[49].mxu1 }
 0x879   : > { %v5438_v0 = vadd.f32 %v3528_v63, %v2500_v45  ;;  %v3789_v2 = vpop.f32.mrb[50].mxu1 }
 0x87a   : > { %v2533_v3 = vmul.f32 %v5436_v37, %v5436_v37  ;;  %v5442_v4 = vadd.f32 %v3789_v2, %v3528_v63  ;;  %v2503_v5 = vpop.f32.mrb[51].mxu1 }
 0x87b   : > { %v2531_v61 = vmul.f32 %v5438_v0, %v5438_v0  ;;  %v5446_v62 = vadd.f32 %v3528_v63, %v2503_v5 }
 0x87c   : > { %v2541_v7 = vmul.f32 %v2533_v3, %v5436_v37  ;;  %v2534_v10 = vmul.f32 %v5442_v4, %v5442_v4 }
 0x87d   : > { %v2539_v59 = vmul.f32 %v2531_v61, %v5438_v0  ;;  %v2532_v14 = vmul.f32 %v5446_v62, %v5446_v62 }
 0x87e   : > { %v2549_v17 = vmul.f32 0.044715, %v2541_v7  ;;  %v2542_v6 = vmul.f32 %v2534_v10, %v5442_v4 }
 0x87f   : > { %v2547_v20 = vmul.f32 0.044715, %v2539_v59  ;;  %v2540_v22 = vmul.f32 %v2532_v14, %v5446_v62 }
 0x880   : > { %v2557_v24 = vadd.f32 %v2549_v17, %v5436_v37  ;;  %v2550_v25 = vmul.f32 0.044715, %v2542_v6 }
 0x881   : > { %v2555_v27 = vadd.f32 %v2547_v20, %v5438_v0  ;;  %v2548_v11 = vmul.f32 0.044715, %v2540_v22 }
 0x882   : > { %v2565_v28 = vmul.f32 0.7978846, %v2557_v24  ;;  %v2558_v29 = vadd.f32 %v2550_v25, %v5442_v4 }
 0x883   : > { %v2563_v31 = vmul.f32 0.7978846, %v2555_v27  ;;  %v2556_v32 = vadd.f32 %v2548_v11, %v5446_v62 }
 0x884   : > { %4083 = vtanh.f32 %v2565_v28  ;;  %v2566_v33 = vmul.f32 0.7978846, %v2558_v29 }
 0x885   : > { %4085 = vtanh.f32 %v2563_v31  ;;  %v2564_v21 = vmul.f32 0.7978846, %v2556_v32 }
 0x886   : > { %4087 = vtanh.f32 %v2566_v33 }
 0x887   : > { %4089 = vtanh.f32 %v2564_v21  ;;  %v3792_v35 = vpop.f32.mrb[52].mxu1 }
 0x888   : > { %v5460_v26 = vadd.f32 %v3792_v35, %v3528_v63  ;;  %v2516_v30 = vpop.f32.mrb[53].mxu1 }
 0x889   : > { %v5462_v41 = vadd.f32 %v3528_v63, %v2516_v30  ;;  %v3793_v42 = vpop.f32.mrb[54].mxu1 }
 0x88a   : > { %v2537_v44 = vmul.f32 %v5460_v26, %v5460_v26  ;;  %v2528_v47 = vadd.f32 %v3793_v42, %v3528_v63  ;;  %v2519_v49 = vpop.f32.mrb[55].mxu1 }
 0x88b   : > { %v2535_v48 = vmul.f32 %v5462_v41, %v5462_v41  ;;  %v2520_v52 = vadd.f32 %v3528_v63, %v2519_v49 }
 0x88c   : > { %v2545_v53 = vmul.f32 %v2537_v44, %v5460_v26  ;;  %v2538_v54 = vmul.f32 %v2528_v47, %v2528_v47 }
 0x88d   : > { %v2543_v8 = vmul.f32 %v2535_v48, %v5462_v41  ;;  %v2536_v51 = vmul.f32 %v2520_v52, %v2520_v52 }
 0x88e   : > { %v4084_v36 = vpop.eup %4083  ;;  %v2553_v43 = vmul.f32 0.044715, %v2545_v53  ;;  %v2546_v34 = vmul.f32 %v2538_v54, %v2528_v47 }
 0x88f   : > { %v4086_v9 = vpop.eup %4085  ;;  %v2581_v57 = vadd.f32 1.0, %v4084_v36  ;;  %v2551_v12 = vmul.f32 0.044715, %v2543_v8  ;;  %v2544_v19 = vmul.f32 %v2536_v51, %v2520_v52 }
 0x890   : > { %v4088_v50 = vpop.eup %4087  ;;  %v2561_v58 = vadd.f32 %v2553_v43, %v5460_v26  ;;  %v2554_v60 = vmul.f32 0.044715, %v2546_v34  ;;  %v2579_v13 = vadd.f32 1.0, %v4086_v9  ;;  %v3535_v43 = vld [vmem:[#allocation19] ss:$0 sm:$0xff] }
 0x891   : > { %v4090_v45 = vpop.eup %4089  ;;  %v2589_v63 = vmul.f32 0.5, %v2581_v57  ;;  %v2582_v2 = vadd.f32 1.0, %v4088_v50  ;;  %v2559_v3 = vadd.f32 %v2551_v12, %v5462_v41  ;;  %v2552_v5 = vmul.f32 0.044715, %v2544_v19 }
 0x892   : > { %v2569_v61 = vmul.f32 0.7978846, %v2561_v58  ;;  %v2562_v7 = vadd.f32 %v2554_v60, %v2528_v47  ;;  %v2580_v10 = vadd.f32 1.0, %v4090_v45  ;;  %v2587_v59 = vmul.f32 0.5, %v2579_v13 }
 0x893   : > { %v2590_v14 = vmul.f32 0.5, %v2582_v2  ;;  %v2567_v17 = vmul.f32 0.7978846, %v2559_v3  ;;  %v2560_v6 = vadd.f32 %v2552_v5, %v2520_v52  ;;  %v2597_v24 = vmul.f32 %v2589_v63, %v5436_v37 }
 0x894   : > { %4091 = vtanh.f32 %v2569_v61  ;;  %v2570_v20 = vmul.f32 0.7978846, %v2562_v7  ;;  %v2588_v22 = vmul.f32 0.5, %v2580_v10  ;;  %v2595_v11 = vmul.f32 %v2587_v59, %v5438_v0 }
 0x895   : > { %v2598_v25 = vmul.f32 %v2590_v14, %v5442_v4  ;;  %4093 = vtanh.f32 %v2567_v17  ;;  %v2568_v27 = vmul.f32 0.7978846, %v2560_v6 }
 0x896   : > { %4095 = vtanh.f32 %v2570_v20  ;;  %v2596_v28 = vmul.f32 %v2588_v22, %v5446_v62 }
 0x897   : > { %v2604_v29 = vpack.c.bf16 %v2598_v25, %v2597_v24  ;;  %4097 = vtanh.f32 %v2568_v27 }
 0x898   : > { %v2603_v31 = vpack.c.bf16 %v2596_v28, %v2595_v11 }
 0x89a   : > { %3810 = vmatprep.mubr.bf16.mxu0 %v2603_v31 }
 0x89b   : > { %3811 = vmatmul.mubr.bf16.vlgmr.msra.gmra.mrb[48].mxu0 %v2604_v29 }
 0x89e   : > { %v4092_v32 = vpop.eup %4091 }
 0x89f   : > { %v4094_v33 = vpop.eup %4093  ;;  %v2585_v21 = vadd.f32 1.0, %v4092_v32 }
 0x8a0   : > { %v4096_v35 = vpop.eup %4095  ;;  %v2583_v30 = vadd.f32 1.0, %v4094_v33 }
 0x8a1   : > { %v4098_v37 = vpop.eup %4097  ;;  %v2586_v42 = vadd.f32 1.0, %v4096_v35  ;;  %v2593_v4 = vmul.f32 0.5, %v2585_v21 }
 0x8a2   : > { %v2584_v44 = vadd.f32 1.0, %v4098_v37  ;;  %v2591_v49 = vmul.f32 0.5, %v2583_v30 }
 0x8a3   : > { %v2594_v48 = vmul.f32 0.5, %v2586_v42  ;;  %v2601_v0 = vmul.f32 %v2593_v4, %v5460_v26 }
 0x8a4   : > { %v2592_v53 = vmul.f32 0.5, %v2584_v44  ;;  %v2599_v54 = vmul.f32 %v2591_v49, %v5462_v41 }
 0x8a5   : > { %v2602_v62 = vmul.f32 %v2594_v48, %v2528_v47 }
 0x8a6   : > { %v2600_v8 = vmul.f32 %v2592_v53, %v2520_v52 }
 0x8a7   : > { %v2606_v51 = vpack.c.bf16 %v2602_v62, %v2601_v0 }
 0x8a8   : > { %v2605_v36 = vpack.c.bf16 %v2600_v8, %v2599_v54 }
 0x8aa   : > { %3814 = vmatprep.mubr.bf16.mxu0 %v2605_v36 }
 0x8ab   : > { %3815 = vmatmul.mubr.bf16.gmra.mrb[52].mxu0 %v2606_v51 }
 0x96e   : > { %v3812_v34 = vpop.f32.mrb[48].mxu0 }
 0x96f   : > { %v2721_v9 = vadd.f32 %v3812_v34, %v3535_v43  ;;  %v2712_v57 = vpop.f32.mrb[49].mxu0 }
 0x970   : > { %v2713_v12 = vadd.f32 %v3535_v43, %v2712_v57  ;;  %v3813_v19 = vpop.f32.mrb[50].mxu0  ;;  %v2909_v57 = vsub.s32 3, %v5225_v56 }
 0x971   : > { %v2724_v50 = vadd.f32 %v3813_v19, %v3535_v43  ;;  %v2715_v58 = vpop.f32.mrb[51].mxu0  ;;  %v2745_v60 = vadd.f32 %v2721_v9, %v5385_v38 }
 0x972   : > { %v2716_v13 = vadd.f32 %v3535_v43, %v2715_v58  ;;  %v2743_v26 = vadd.f32 %v2713_v12, %v5378_v23 }
 0x973   : > { %v2759_v41 = vsel %vm952_vm0, %v2745_v60, 0.0  ;;  %v2746_v47 = vadd.f32 %v2724_v50, %v5387_v39 }
 0x974   : > { %2760 = vadd.xlane.f32.xlu1 %v2759_v41  ;;  %v2753_v52 = vsel %vm952_vm0, %v2743_v26, 0.0  ;;  %v2744_v45 = vadd.f32 %v2716_v13, %v5380_v16 }
 0x975   : > { %2754 = vadd.xlane.f32.xlu0 %v2753_v52  ;;  %v2762_v63 = vsel %vm952_vm0, %v2746_v47, 0.0 }
 0x976   : > { %v2756_v2 = vsel %vm952_vm0, %v2744_v45, 0.0 }
 0x978   : > { %2763 = vadd.xlane.f32.xlu1 %v2762_v63  ;;  %v2937_v63 = vsub.s32 7, %v5225_v56 }
 0x979   : > { %2757 = vadd.xlane.f32.xlu0 %v2756_v2 }
 0x97e   : > { %v3816_v38 = vpop.f32.mrb[52].mxu0 }
 0x97f   : > { %v2728_v3 = vpop.f32.mrb[53].mxu0  ;;  %v2737_v23 = vadd.f32 %v3816_v38, %v3535_v43 }
 0x980   : > { %v2729_v5 = vadd.f32 %v3535_v43, %v2728_v3  ;;  %v3817_v61 = vpop.f32.mrb[54].mxu0 }
 0x981   : > { %v2740_v7 = vadd.f32 %v3817_v61, %v3535_v43  ;;  %v2731_v39 = vpop.f32.mrb[55].mxu0  ;;  %v2749_v17 = vadd.f32 %v2737_v23, %v5403_v40 }
 0x982   : > { %v2732_v10 = vadd.f32 %v3535_v43, %v2731_v39  ;;  %v2747_v59 = vadd.f32 %v2729_v5, %v5396_v55 }
 0x983   : > { %v5488_v16 = vadd.f32 %v2740_v7, %v5405_v15  ;;  %v2771_v55 = vsel %vm952_vm0, %v2749_v17, 0.0  ;;  %v5503_v15 = vld [vmem:[%s915_s3] sm:$0xff]  ;;  %s901_s3 = scalar_lea.vmem [#allocation23], %s3476_s14 }
 0x984   : > { %v2765_v14 = vsel %vm952_vm0, %v2747_v59, 0.0  ;;  %v5495_v20 = vadd.f32 %v2732_v10, %v5398_v46  ;;  %v3006_v22 = vsel %vm1706_vm3, %v5503_v15, 0.0  ;;  %v2895_v46 = vsub.s32 1, %v5225_v56  ;;  %s3237_s28 = sshll.u32 %s901_s3, 4  ;;  %s5645_s28 = int_to_ptr.vmem [resolvable:$true] %s3237_s28 }
 0x985   : > { %2766 = vadd.xlane.f32.xlu0 %v2765_v14  ;;  %v2774_v6 = vsel %vm952_vm0, %v5488_v16, 0.0  ;;  %v2889_v9 = vrot.slane %v5503_v15, %v5229_v1  ;;  %v2910_v58 = vrot.slane %v5503_v15, %v2909_v57  ;;  %v2938_v2 = vrot.slane %v5503_v15, %v2937_v63  ;;  %s4500_s5 = scalar_lea.vmem %s5645_s28, 128 }
 0x986   : > { %2775 = vadd.xlane.f32.xlu1 %v2774_v6  ;;  %v2768_v40 = vsel %vm952_vm0, %v5495_v20, 0.0  ;;  %v2896_v24 = vrot.slane %v5503_v15, %v2895_v46  ;;  %v2930_v14 = vsub.s32 6, %v5225_v56  ;;  %v4032_v6 = vld [vmem:[%s5704_s19 + $0x8] sm:$0xff]   ;;  %p4501_p6 = scmp.ne.s32.totalorder %s5645_s28, %s4500_s5 }
 0x988   : > { %p4502_p9 = pnand %p4501_p6, %p5792_p5 }
 0x989   : > { %2772 = vadd.xlane.f32.xlu0 %v2771_v55 }
 0x98a   : > { %2769 = vadd.xlane.f32.xlu1 %v2768_v40  ;;  %p4503_p12 = pneg %p4502_p9 }
 0x98d   : > { %3007 = vadd.xlane.f32.xlu0 %v3006_v22 }
 0x99b   : > { %2898 = vbcast.lane.b32.xlu1 %v2896_v24, 256 }
 0xa01   : > { %v2761_v25 = vpop.xlane.xlu1 %2760 }
 0xa02   : > { %v2779_v27 = vmul.f32 0.03125, %v2761_v25  ;;  %v2755_v11 = vpop.xlane.xlu0 %2754 }
 0xa03   : > { %v2777_v28 = vmul.f32 0.03125, %v2755_v11 }
 0xa04   : > { %v5511_v29 = vsub.f32 %v2745_v60, %v2779_v27  ;;  %v2916_v60 = vsub.s32 4, %v5225_v56 }
 0xa05   : > { %v5513_v31 = vsub.f32 %v2743_v26, %v2777_v28  ;;  %v2764_v32 = vpop.xlane.xlu1 %2763  ;;  %v2902_v26 = vsub.s32 2, %v5225_v56 }
 0xa06   : > { %v2780_v33 = vmul.f32 0.03125, %v2764_v32  ;;  %v2758_v21 = vpop.xlane.xlu0 %2757  ;;  %v2795_v35 = vmul.f32 %v5511_v29, %v5511_v29  ;;  %v2917_v1 = vrot.slane %v5503_v15, %v2916_v60  ;;  %v5589_v60 = vld [vmem:[%s5786_s26] ss:$0 sm:$0xff]  ;;  %s4610_s26 = smov [#allocation23]  }
 0xa07   : > { %v2778_v30 = vmul.f32 0.03125, %v2758_v21  ;;  %v2793_v37 = vmul.f32 %v5513_v31, %v5513_v31  ;;  %v2903_v41 = vrot.slane %v5503_v15, %v2902_v26  ;;  %s4504_s0 = sshll.u32 %s4610_s26, 4  ;;  %s4505_s0 = int_to_ptr.vmem [resolvable:$false] %s4504_s0 }
 0xa08   : > { %v5519_v42 = vsub.f32 %v2746_v47, %v2780_v33  ;;  %v2807_v4 = vsel %vm952_vm0, %v2795_v35, 0.0  ;;  %v2923_v47 = vsub.s32 5, %v5225_v56  ;;  %s4506_s2 = scalar_lea.vmem %s4505_s0, 256  ;;  %p4507_p10 = scmp.lt.s32.totalorder %s5645_s28, %s4505_s0 }
 0xa09   : > { %v5522_v44 = vsub.f32 %v2744_v45, %v2778_v30  ;;  %2808 = vadd.xlane.f32.xlu1 %v2807_v4  ;;  %v2801_v49 = vsel %vm952_vm0, %v2793_v37, 0.0  ;;  %p4508_p2 = scmp.lt.s32.totalorder %s4506_s2, %s4500_s5 }
 0xa0a   : > { %2802 = vadd.xlane.f32.xlu0 %v2801_v49  ;;  %v2796_v48 = vmul.f32 %v5519_v42, %v5519_v42  ;;  %v2924_v45 = vrot.slane %v5503_v15, %v2923_v47 }
 0xa0b   : > { %v2794_v53 = vmul.f32 %v5522_v44, %v5522_v44  ;;  %p4509_p3 = por %p4508_p2, %p4507_p10 }
 0xa0c   : > { %v2810_v0 = vsel %vm952_vm0, %v2796_v48, 0.0 }
 0xa0d   : > { %2811 = vadd.xlane.f32.xlu1 %v2810_v0  ;;  %v2804_v62 = vsel %vm952_vm0, %v2794_v53, 0.0  ;;  %p4510_p4 = pnand %p4509_p3, %p4503_p12 }
 0xa0e   : > { %2805 = vadd.xlane.f32.xlu0 %v2804_v62 }
 0xa12   : > { %v2767_v54 = vpop.xlane.xlu0 %2766 }
 0xa13   : > { %v2781_v8 = vmul.f32 0.03125, %v2767_v54  ;;  %v2776_v52 = vpop.xlane.xlu1 %2775 }
 0xa14   : > { %v2784_v38 = vmul.f32 0.03125, %v2776_v52 }
 0xa15   : > { %v5531_v43 = vsub.f32 %v2747_v59, %v2781_v8 }
 0xa16   : > { %v2773_v51 = vpop.xlane.xlu0 %2772  ;;  %v5554_v23 = vsub.f32 %v5488_v16, %v2784_v38  ;;  %v2931_v16 = vrot.slane %v5503_v15, %v2930_v14 }
 0xa17   : > { %v2783_v36 = vmul.f32 0.03125, %v2773_v51  ;;  %v2797_v50 = vmul.f32 %v5531_v43, %v5531_v43  ;;  %v2770_v3 = vpop.xlane.xlu1 %2769 }
 0xa18   : > { %v2782_v5 = vmul.f32 0.03125, %v2770_v3  ;;  %v2800_v7 = vmul.f32 %v5554_v23, %v5554_v23 }
 0xa19   : > { %v5533_v34 = vsub.f32 %v2749_v17, %v2783_v36  ;;  %v2813_v13 = vsel %vm952_vm0, %v2797_v50, 0.0  ;;  %v4031_v17 = vld [vmem:[%s5704_s19] sm:$0xff]  }
 0xa1a   : > { %v5557_v61 = vsub.f32 %v5495_v20, %v2782_v5  ;;  %v2822_v39 = vsel %vm952_vm0, %v2800_v7, 0.0  ;;  %3819 = vmatpush3.bf16.msra.mxu1 %v4031_v17  ;;  %v5575_v20 = vpop.xlane.xlu0 %3007 }
 0xa1b   : > { %v2799_v12 = vmul.f32 %v5533_v34, %v5533_v34  ;;  %3820 = vmatprep.subr.bf16.mxu1 %v4607_v18  ;;  %v2899_v15 = vpop.permute.xlu1 %2898 }
 0xa1c   : > { %v2798_v10 = vmul.f32 %v5557_v61, %v5557_v61 }
 0xa1d   : > { %v2819_v19 = vsel %vm952_vm0, %v2799_v12, 0.0 }
 0xa1e   : > { %2891 = vbcast.lane.b32.xlu1 %v2889_v9, 256  ;;  %2820 = vadd.xlane.f32.xlu0 %v2819_v19  ;;  %v2816_v59 = vsel %vm952_vm0, %v2798_v10, 0.0  ;;  %v5579_v9 = vld [vmem:[#allocation20] ss:$0 sm:$0xff] }
 0xa1f   : > { %3821 = vmatpush3.bf16.msra.mxu1 %v4032_v6 }
 0xa20   : > { %3826 = vmatprep.subr.bf16.mxu1 %v4607_v18 }
 0xa22   : > { %2912 = vbcast.lane.b32.xlu1 %v2910_v58, 256  ;;  %2814 = vadd.xlane.f32.xlu0 %v2813_v13 }
 0xa26   : > { %2919 = vbcast.lane.b32.xlu1 %v2917_v1, 256 }
 0xa38   : > { %2905 = vbcast.lane.b32.xlu0 %v2903_v41, 256 }
 0xa3c   : > { %2926 = vbcast.lane.b32.xlu0 %v2924_v45, 256 }
 0xa40   : > { %2940 = vbcast.lane.b32.xlu0 %v2938_v2, 256 }
 0xa4a   : > { %2823 = vadd.xlane.f32.xlu1 %v2822_v39 }
 0xa4e   : > { %2817 = vadd.xlane.f32.xlu1 %v2816_v59 }
 0xa5f   : > { %2933 = vbcast.lane.b32.xlu1 %v2931_v16, 256 }
 0xa96   : > { %v2809_v22 = vpop.xlane.xlu1 %2808 }
 0xa97   : > { %v2803_v56 = vpop.xlane.xlu0 %2802  ;;  %v2827_v24 = vmul.f32 0.03125, %v2809_v22 }
 0xa98   : > { %v2825_v11 = vmul.f32 0.03125, %v2803_v56 }
 0xa99   : > { %v2835_v33 = vadd.f32 1e-05, %v2827_v24 }
 0xa9a   : > { %v2812_v27 = vpop.xlane.xlu1 %2811  ;;  %v2833_v35 = vadd.f32 1e-05, %v2825_v11  ;;  %v5608_v11 = vadd.f32 1e-09, %v5575_v20 }
 0xa9b   : > { %v2806_v55 = vpop.xlane.xlu0 %2805  ;;  %v2828_v21 = vmul.f32 0.03125, %v2812_v27 }
 0xa9c   : > { %v2826_v46 = vmul.f32 0.03125, %v2806_v55 }
 0xa9d   : > { %v2836_v37 = vadd.f32 1e-05, %v2828_v21 }
 0xa9e   : > { %v2834_v28 = vadd.f32 1e-05, %v2826_v46  ;;  %v2892_v62 = vpop.permute.xlu1 %2891 }
 0xaa0   : > { %4099 = vrsqrt.f32 %v2834_v28 }
 0xaa1   : > { %4101 = vrsqrt.f32 %v2835_v33 }
 0xaa2   : > { %4103 = vrsqrt.f32 %v2833_v35  ;;  %v2913_v58 = vpop.permute.xlu1 %2912 }
 0xaa6   : > { %v2920_v47 = vpop.permute.xlu1 %2919 }
 0xaaa   : > { %v4100_v49 = vpop.eup %4099 }
 0xaab   : > { %v2821_v40 = vpop.xlane.xlu0 %2820  ;;  %v4102_v53 = vpop.eup %4101  ;;  %v2850_v0 = vmul.f32 %v4100_v49, %v5522_v44 }
 0xaac   : > { %v2831_v4 = vmul.f32 0.03125, %v2821_v40  ;;  %v4104_v54 = vpop.eup %4103  ;;  %v2851_v51 = vmul.f32 %v4102_v53, %v5511_v29 }
 0xaad   : > { %v2864_v57 = vmul.f32 %v5579_v9, %v2850_v0  ;;  %v2849_v19 = vmul.f32 %v4104_v54, %v5513_v31 }
 0xaae   : > { %v2839_v48 = vadd.f32 1e-05, %v2831_v4  ;;  %v2865_v44 = vmul.f32 %v5579_v9, %v2851_v51  ;;  %v3012_v4 = vrot.slane %v5608_v11, 2 }
 0xaaf   : > { %v2815_v25 = vpop.xlane.xlu0 %2814  ;;  %v2878_v29 = vadd.f32 %v5589_v60, %v2864_v57  ;;  %v2863_v26 = vmul.f32 %v5579_v9, %v2849_v19  ;;  %v3013_v57 = vrot.slane %v5608_v11, 3 }
 0xab0   : > { %v2829_v32 = vmul.f32 0.03125, %v2815_v25  ;;  %v2879_v31 = vadd.f32 %v5589_v60, %v2865_v44 }
 0xab1   : > { %v2943_v41 = vmul.f32 %v2899_v15, %v2878_v29  ;;  %v2877_v63 = vadd.f32 %v5589_v60, %v2863_v26 }
 0xab2   : > { %v2837_v30 = vadd.f32 1e-05, %v2829_v32 }
 0xab3   : > { %v2906_v1 = vpop.permute.xlu0 %2905  ;;  %v2957_v3 = vsel %vm952_vm0, %v2943_v41, 0.0  ;;  %v2942_v59 = vmul.f32 %v2892_v62, %v2877_v63  ;;  %v3014_v62 = vrot.slane %v5608_v11, 4  ;;  %v3016_v63 = vrot.slane %v5608_v11, 6 }
 0xab4   : > { %4105 = vrsqrt.f32 %v2837_v30  ;;  %v2944_v52 = vmul.f32 %v2906_v1, %v2879_v31  ;;  %v2958_v16 = vrot.slane %v2957_v3, 4  ;;  %v3011_v30 = vrot.slane %v5608_v11, 1 }
 0xab5   : > { %4107 = vrsqrt.f32 %v2836_v37 }
 0xab6   : > { %4109 = vrsqrt.f32 %v2839_v48  ;;  %v2964_v5 = vsel %vm952_vm0, %v2944_v52, 0.0  ;;  %v2959_v46 = vadd.f32 %v2958_v16, %v2957_v3 }
 0xab7   : > { %v2965_v17 = vrot.slane %v2964_v5, 4 }
 0xab8   : > { %v2960_v37 = vrot.slane %v2959_v46, 2 }
 0xab9   : > { %v2966_v24 = vadd.f32 %v2965_v17, %v2964_v5 }
 0xabb   : > { %v2967_v49 = vrot.slane %v2966_v24, 2 }
 0xabe   : > { %v4106_v8 = vpop.eup %4105 }
 0xabf   : > { %v4108_v36 = vpop.eup %4107  ;;  %v2853_v12 = vmul.f32 %v4106_v8, %v5531_v43  ;;  %v2927_v8 = vpop.permute.xlu0 %2926 }
 0xac0   : > { %v2852_v50 = vmul.f32 %v4108_v36, %v5519_v42  ;;  %v4110_v42 = vpop.eup %4109  ;;  %v2961_v36 = vadd.f32 %v2960_v37, %v2959_v46 }
 0xac1   : > { %v2867_v13 = vmul.f32 %v5579_v9, %v2853_v12  ;;  %v2855_v38 = vmul.f32 %v4110_v42, %v5533_v34  ;;  %v2950_v34 = vsel %vm952_vm0, %v2942_v59, 0.0  ;;  %v2968_v12 = vadd.f32 %v2967_v49, %v2966_v24 }
 0xac2   : > { %v2866_v43 = vmul.f32 %v5579_v9, %v2852_v50  ;;  %v2951_v33 = vrot.slane %v2950_v34, 4  ;;  %v2962_v26 = vrot.slane %v2961_v36, 1 }
 0xac3   : > { %v2881_v45 = vadd.f32 %v5589_v60, %v2867_v13  ;;  %v2869_v56 = vmul.f32 %v5579_v9, %v2855_v38  ;;  %v2941_v31 = vpop.permute.xlu0 %2940  ;;  %v3017_v38 = vrot.slane %v5608_v11, 7 }
 0xac4   : > { %v2880_v2 = vadd.f32 %v5589_v60, %v2866_v43  ;;  %v2952_v20 = vadd.f32 %v2951_v33, %v2950_v34  ;;  %v2969_v43 = vrot.slane %v2968_v12, 1  ;;  %v2963_v5 = vadd.f32 %v2962_v26, %v2961_v36 }
 0xac5   : > { %v2946_v39 = vmul.f32 %v2920_v47, %v2881_v45  ;;  %v2883_v27 = vadd.f32 %v5589_v60, %v2869_v56 }
 0xac6   : > { %v2945_v14 = vmul.f32 %v2913_v58, %v2880_v2  ;;  %v2953_v44 = vrot.slane %v2952_v20, 2 }
 0xac7   : > { %v2978_v15 = vsel %vm952_vm0, %v2946_v39, 0.0 }
 0xac8   : > { %v2971_v22 = vsel %vm952_vm0, %v2945_v14, 0.0  ;;  %v2979_v28 = vrot.slane %v2978_v15, 4  ;;  %v2954_v45 = vadd.f32 %v2953_v44, %v2952_v20 }
 0xac9   : > { %v2972_v21 = vrot.slane %v2971_v22, 4 }
 0xaca   : > { %v2980_v53 = vadd.f32 %v2979_v28, %v2978_v15  ;;  %v2955_v17 = vrot.slane %v2954_v45, 1 }
 0xacb   : > { %v2973_v54 = vadd.f32 %v2972_v21, %v2971_v22 }
 0xacc   : > { %v2981_v19 = vrot.slane %v2980_v53, 2  ;;  %v2956_v28 = vadd.f32 %v2955_v17, %v2954_v45 }
 0xacd   : > { %v2974_v29 = vrot.slane %v2973_v54, 2 }
 0xace   : > { %v2982_v42 = vadd.f32 %v2981_v19, %v2980_v53 }
 0xad7   : > { %v2824_v7 = vpop.xlane.xlu1 %2823 }
 0xad8   : > { %v2832_v10 = vmul.f32 0.03125, %v2824_v7  ;;  %v2970_v7 = vadd.f32 %v2969_v43, %v2968_v12 }
 0xada   : > { %v2840_v6 = vadd.f32 1e-05, %v2832_v10  ;;  %v2983_v10 = vrot.slane %v2982_v42, 1 }
 0xadb   : > { %v2818_v55 = vpop.xlane.xlu1 %2817 }
 0xadc   : > { %4111 = vrsqrt.f32 %v2840_v6  ;;  %v2830_v40 = vmul.f32 0.03125, %v2818_v55  ;;  %v3015_v55 = vrot.slane %v5608_v11, 5  ;;  %v2984_v46 = vadd.f32 %v2983_v10, %v2982_v42 }
 0xade   : > { %v2838_v25 = vadd.f32 1e-05, %v2830_v40 }
 0xadf   : > { %v2934_v32 = vpop.permute.xlu1 %2933 }
 0xae0   : > { %4113 = vrsqrt.f32 %v2838_v25  ;;  %v2948_v35 = vmul.f32 %v2934_v32, %v2883_v27 }
 0xae1   : > { %4115 = vrcp.f32 %v3011_v30 }
 0xae2   : > { %v2992_v48 = vsel %vm952_vm0, %v2948_v35, 0.0  ;;  %4117 = vrcp.f32 %v3012_v4 }
 0xae3   : > { %v2993_v0 = vrot.slane %v2992_v48, 4  ;;  %4119 = vrcp.f32 %v3014_v62 }
 0xae4   : > { %4121 = vrcp.f32 %v5608_v11 }
 0xae5   : > { %v2994_v50 = vadd.f32 %v2993_v0, %v2992_v48  ;;  %4123 = vrcp.f32 %v3013_v57 }
 0xae6   : > { %v4112_v51 = vpop.eup %4111  ;;  %4125 = vrcp.f32 %v3016_v63 }
 0xae7   : > { %v2856_v58 = vmul.f32 %v4112_v51, %v5554_v23  ;;  %v2995_v41 = vrot.slane %v2994_v50, 2  ;;  %v2975_v23 = vadd.f32 %v2974_v29, %v2973_v54  ;;  %4127 = vrcp.f32 %v3017_v38 }
 0xae8   : > { %4129 = vrcp.f32 %v3015_v55 }
 0xae9   : > { %v2870_v13 = vmul.f32 %v5579_v9, %v2856_v58  ;;  %v2996_v59 = vadd.f32 %v2995_v41, %v2994_v50  ;;  %v2976_v6 = vrot.slane %v2975_v23, 1 }
 0xaea   : > { %v4114_v1 = vpop.eup %4113 }
 0xaeb   : > { %v2854_v47 = vmul.f32 %v4114_v1, %v5557_v61  ;;  %v2884_v52 = vadd.f32 %v5589_v60, %v2870_v13  ;;  %v4116_v39 = vpop.eup %4115  ;;  %v2997_v25 = vrot.slane %v2996_v59, 1  ;;  %v2977_v32 = vadd.f32 %v2976_v6, %v2975_v23 }
 0xaec   : > { %v4118_v16 = vpop.eup %4117  ;;  %v3029_v40 = vmul.f32 %v4116_v39, %v2963_v5 }
 0xaed   : > { %v2868_v2 = vmul.f32 %v5579_v9, %v2854_v47  ;;  %v2949_v3 = vmul.f32 %v2941_v31, %v2884_v52  ;;  %v4120_v15 = vpop.eup %4119  ;;  %v3031_v24 = vmul.f32 %v4118_v16, %v2970_v7  ;;  %v2998_v4 = vadd.f32 %v2997_v25, %v2996_v59 }
 0xaee   : > { %v4122_v22 = vpop.eup %4121  ;;  %v3043_v35 = vpack.c.bf16 %v3029_v40, %v3029_v40  ;;  %v3035_v49 = vmul.f32 %v4120_v15, %v2984_v46  ;;  %v4034_v15 = vld [vmem:[#allocation22 + $0x8] sm:$0xff]   ;;  %v3546_v40 = vld [vmem:[%s5788_s30] ss:$0 sm:$0xff] }
 0xaef   : > { %v2882_v14 = vadd.f32 %v5589_v60, %v2868_v2  ;;  %v2999_v61 = vsel %vm952_vm0, %v2949_v3, 0.0  ;;  %v4124_v27 = vpop.eup %4123  ;;  %v3044_v37 = vpack.c.bf16 %v3031_v24, %v3031_v24  ;;  %v3027_v48 = vmul.f32 %v4122_v22, %v2956_v28 }
 0xaf0   : > { %v3000_v56 = vrot.slane %v2999_v61, 4  ;;  %v3033_v53 = vmul.f32 %v4124_v27, %v2977_v32  ;;  %v4126_v20 = vpop.eup %4125  ;;  %v3070_v54 = vunpack.c.l.b16 %v3043_v35  ;;  %v3046_v19 = vpack.c.bf16 %v3035_v49, %v3035_v49 }
 0xaf1   : > { %v2947_v9 = vmul.f32 %v2927_v8, %v2882_v14  ;;  %v4128_v36 = vpop.eup %4127  ;;  %v3071_v57 = vunpack.c.l.b16 %v3044_v37  ;;  %v3039_v12 = vmul.f32 %v4126_v20, %v2998_v4  ;;  %v3042_v50 = vpack.c.bf16 %v3027_v48, %v3027_v48 }
 0xaf2   : > { %v3001_v34 = vadd.f32 %v3000_v56, %v2999_v61  ;;  %v3045_v58 = vpack.c.bf16 %v3033_v53, %v3033_v53  ;;  %v3077_v13 = vrot.slane %v3070_v54, 7  ;;  %v4130_v26 = vpop.eup %4129  ;;  %v3073_v42 = vunpack.c.l.b16 %v3046_v19 }
 0xaf3   : > { %v2985_v60 = vsel %vm952_vm0, %v2947_v9, 0.0  ;;  %v3080_v43 = vrot.slane %v3071_v57, 6  ;;  %v3048_v31 = vpack.c.bf16 %v3039_v12, %v3039_v12  ;;  %v3069_v41 = vunpack.c.l.b16 %v3042_v50  ;;  %v4033_v9 = vld [vmem:[#allocation22] sm:$0xff]  }
 0xaf4   : > { %v2986_v33 = vrot.slane %v2985_v60, 4  ;;  %v3002_v21 = vrot.slane %v3001_v34, 2  ;;  %v3072_v47 = vunpack.c.l.b16 %v3045_v58  ;;  %v3086_v3 = vrot.slane %v3073_v42, 4 }
 0xaf5   : > { %v3079_v23 = vsel %vm3078_vm4, %v3077_v13, %v3069_v41  ;;  %v3075_v38 = vunpack.c.l.b16 %v3048_v31 }
 0xaf6   : > { %v2987_v30 = vadd.f32 %v2986_v33, %v2985_v60  ;;  %v3003_v11 = vadd.f32 %v3002_v21, %v3001_v34  ;;  %v3082_v2 = vsel %vm3081_vm5, %v3080_v43, %v3079_v23  ;;  %v3083_v5 = vrot.slane %v3072_v47, 5 }
 0xaf7   : > { %v3092_v14 = vrot.slane %v3075_v38, 2 }
 0xaf8   : > { %v2988_v0 = vrot.slane %v2987_v30, 2  ;;  %v3004_v62 = vrot.slane %v3003_v11, 1  ;;  %v3085_v10 = vsel %vm3084_vm6, %v3083_v5, %v3082_v2 }
 0xaf9   : > { %v3088_v61 = vsel %vm3087_vm7, %v3086_v3, %v3085_v10 }
 0xafa   : > { %v2989_v8 = vadd.f32 %v2988_v0, %v2987_v30  ;;  %v3005_v51 = vadd.f32 %v3004_v62, %v3003_v11 }
 0xafc   : > { %v2990_v44 = vrot.slane %v2989_v8, 1  ;;  %v3041_v29 = vmul.f32 %v4128_v36, %v3005_v51 }
 0xafe   : > { %v2991_v1 = vadd.f32 %v2990_v44, %v2989_v8  ;;  %v3049_v45 = vpack.c.bf16 %v3041_v29, %v3041_v29 }
 0xb00   : > { %v3037_v52 = vmul.f32 %v4130_v26, %v2991_v1  ;;  %v3076_v39 = vunpack.c.l.b16 %v3049_v45 }
 0xb02   : > { %v3047_v63 = vpack.c.bf16 %v3037_v52, %v3037_v52  ;;  %v3095_v17 = vrot.slane %v3076_v39, 1 }
 0xb04   : > { %v3074_v7 = vunpack.c.l.b16 %v3047_v63 }
 0xb06   : > { %v3089_v59 = vrot.slane %v3074_v7, 3 }
 0xb08   : > { %v3091_v16 = vsel %vm3090_vm8, %v3089_v59, %v3088_v61 }
 0xb09   : > { %v3094_v6 = vsel %vm3093_vm9, %v3092_v14, %v3091_v16 }
 0xb0a   : > { %v3097_v56 = vsel %vm3096_vm10, %v3095_v17, %v3094_v6 }
 0xb0b   : > { %v3098_v55 = vpack.c.b16 %v3097_v56, %v3097_v56 }
 0xb0d   : > { %3823 = vmatmul.mubr.msk.bf16.vlgmr.msra.gmra.mrb[56].mxu1 %vm952_vm0, %v3098_v55 }
 0xb0e   : > { %3830 = vmatprep.mubr.msk.bf16.mxu1 %vm4608_vm1, %v4607_v18  ;;  %3827 = vmatpush3.bf16.msra.mxu1 %v4033_v9 }
 0xb0f   : > { %3828 = vmatprep.subr.bf16.mxu1 %v4607_v18  ;;  %v3550_v18 = vld [vmem:[%s5789_s29] ss:$0 sm:$0xff] }
 0xb12   : > { %3829 = vmatpush3.bf16.msra.mxu1 %v4034_v15 }
 0xbe0   : > { %v3148_v34 = vpop.f32.mrb[56].mxu1 }
 0xbe1   : > { %v3149_v22 = vadd.f32 %v3546_v40, %v3148_v34  ;;  %v3824_v46 = vpop.f32.mrb[57].mxu1 }
 0xbe2   : > { %v3151_v24 = vpop.f32.mrb[58].mxu1 }
 0xbe3   : > { %4131 = vtanh.f32 %v3149_v22  ;;  %v3825_v25 = vpop.f32.mrb[59].mxu1 }
 0xbed   : > { %v4132_v60 = vpop.eup %4131 }
 0xbee   : > { %v3155_v27 = vpack.c.bf16 %v4132_v60, %v4132_v60 }
 0xbf0   : > { %3831 = vmatmul.mubr.msk.bf16.vlgmr.msra.gmra.mrb[60].mxu1 %vm952_vm0, %v3155_v27 }
 0xcc3   : > { %v3216_v28 = vpop.f32.mrb[60].mxu1 }
 0xcc4   : > { %v3217_v32 = vadd.f32 %v3550_v18, %v3216_v28  ;;  %v3832_v33 = vpop.f32.mrb[61].mxu1 }
 0xcc5   : > { %v3219_v21 = vpop.f32.mrb[62].mxu1 }
 0xcc6   : > { %3222 = vst [vmem:[%s901_s3] sm:$0xff] %v3217_v32  ;;  %v3833_v35 = vpop.f32.mrb[63].mxu1 }
 0xcc7   : > { %4513 = shalt.err (!%p4510_p4)
}
 0xcc8   : > { %s4514_s24 = scalar_lea.hbm %s5643_s25, 128  ;;  %s4518_s14 = scalar_lea.hbm %s5791_s18, 256 }
 0xcc9   : > { %p4515_p7 = scmp.ne.s32.totalorder %s5643_s25, %s4514_s24  ;;  %p4519_p13 = scmp.lt.u32.totalorder %s5643_s25, %s5791_s18 }
 0xcca   : > { %p4520_p0 = scmp.lt.u32.totalorder %s4518_s14, %s4514_s24  ;;  %p4522_p6 = scmp.lt.u32.totalorder %s4514_s24, %s5643_s25 }
 0xccb   : > { %p4516_p8 = pnand %p4515_p7, %p5792_p5 }
 0xccc   : > { %p4521_p1 = por %p4520_p0, %p4519_p13 }
 0xccd   : > { %p4517_p11 = pneg %p4516_p8 }
 0xcce   : > { %p4523_p9 = por %p4522_p6, %p4521_p1 }
 0xcd0   : > { %p4524_p12 = pnand %p4523_p9, %p4517_p11 }
 0xcd2   : > { %4527 = shalt.err (!%p4524_p12)
}
 0xcd3   : > { %3890 = dma.vmem_to_hbm [thread:$0]  (%p5792_p5), %s5645_s28, 128, %s5643_s25, %s3224_s11  }
 0xcd4 PF: > { %s5793_s29 = sld [smem:[#allocation35_spill]]  ;;  %s5794_s1 = sld [smem:[#allocation32_spill]] }
 0xcd5   : > { %s5795_s3 = sld [smem:[#allocation39_spill]] }
 0xcda   : > { %p3962_p10 = scmp.ge.s32.totalorder %s5793_s29, 2  ;;  %s3249_s22 = sand.u32 1, %s5794_s1  }
 0xcdb   : > { %p5796_p2 = scmp.ne.s32.totalorder %s5795_s3, 0  ;;  %s3250_s4 = scalar_lea.sflag [#allocation4], %s3249_s22 }
 0xcdd   : > { %p3933_p3 = pnand %p3962_p10, %p5796_p2 }
 0xcdf   : > { %4573 = dma.done.wait (!%p3933_p3), %s3250_s4, 128  }
 0xce0   : > { %4575 = vsyncadd (!%p3933_p3), %s3250_s4, 4294967168  ;;  %s5797_s25 = sld [smem:[#allocation36_spill]]  ;;  %s5798_s4 = sld [smem:[#allocation33_spill]] }
 0xce1   : > { %s5799_s30 = sld [smem:[#allocation34_spill]]  ;;  %s5800_s24 = sld [smem:[#allocation37_spill]] }
 0xce6   : > { %p40_p4 = scmp.ge.s32.totalorder %s5797_s25, 4  }
 0xce8   :  { %42 = sbr.rel (!%p40_p4) target bundleno = 27 (0x1b), region = 206 }
 0xcef   :  { %3255 = vsyncpa [#allocation3], 1 }
 0xcf0   :  { %3257 = vsyncpa [#allocation3 + $0x1], 1 }
 0xcf1   :  { %3258 = vsyncpa [#allocation6], 1 }
 0xcf2   :  { %3259 = vsyncpa [#allocation9], 1 }
 0xcf3   :  { %3260 = vsyncpa [#allocation12], 1 }
 0xcf4   :  { %3261 = vsyncpa [#allocation15], 1 }
 0xcf5   :  { %3262 = vsyncpa [#allocation18], 1 }
 0xcf6   :  { %3263 = vsyncpa [#allocation21], 1 }
 0xcf7   :  { %3264 = vsyncpa [#allocation4], 1 }
 0xcf8   :  { %3266 = vsyncpa [#allocation4 + $0x1], 1 }

</bundles_post_ra>
